<compile_context>
chip_gen: v7x
topology: tpu7x:2x2x1
jax: 0.10.0
libtpu: 0.0.40
codegen_flags: <defaults>
</compile_context>

<pallas_src>
import functools

import jax
import jax.numpy as jnp
from jax.experimental import pallas as pl
from jax.experimental.pallas import tpu as pltpu


def _round_up(v, m):
    return (v + m - 1) // m * m


def gin_kernel(num_layers, tile_rows, n_pad,
               x_ref, a_ref, p_ref,
               w1_ref, b1_ref, w2_ref, b2_ref,
               fw1_ref, fb1_ref, fw2_ref, fb2_ref,
               out_ref,
               h_ref, pooled_ref):
    """Grid = (layer, row_tile).  h_ref is a (2*n_pad, HP) ping-pong node-feature buffer."""
    layer = pl.program_id(0)
    tile = pl.program_id(1)
    n_tiles = pl.num_programs(1)

    cur = layer & 1                                   # half of h_ref holding this layer's input
    row0 = pl.multiple_of(tile * tile_rows, tile_rows)
    cur_base = pl.multiple_of(cur * n_pad, n_pad)
    nxt_base = pl.multiple_of((1 - cur) * n_pad, n_pad)

    # First grid step: seed slot 0 with (padded) node features, zero the pooled accumulator.
    @pl.when((layer == 0) & (tile == 0))
    def _init():
        h_ref[:n_pad, :] = x_ref[...]
        pooled_ref[...] = jnp.zeros_like(pooled_ref)

    # Neighbour aggregation for this row stripe: (I + A)[rows, :] @ h.
    # A_hat arrives as bf16 (exact small-integer counts, half the HBM bytes); accumulate in f32.
    # (For compute-bound regimes one could also cast h to bf16 to hit the native MXU bf16 path.)
    a_tile = a_ref[...].astype(jnp.float32)
    h_cur = h_ref[pl.ds(cur_base, n_pad), :]
    agg = jnp.dot(a_tile, h_cur, preferred_element_type=jnp.float32)

    # GINConv MLP: Linear (eval BatchNorm folded in) -> ReLU -> Linear, then the outer .relu().
    z = jnp.dot(agg, w1_ref[0], preferred_element_type=jnp.float32) + b1_ref[0]
    z = jnp.maximum(z, 0.0)
    z = jnp.dot(z, w2_ref[0], preferred_element_type=jnp.float32) + b2_ref[0]
    h_new = jnp.maximum(z, 0.0)

    # Write this layer's output rows into the other half of the ping-pong buffer.
    dst = pl.multiple_of(nxt_base + row0, tile_rows)
    h_ref[pl.ds(dst, tile_rows), :] = h_new

    # Last GIN layer: accumulate this row stripe's contribution to global_mean_pool.
    @pl.when(layer == num_layers - 1)
    def _pool():
        pooled_ref[...] += jnp.dot(p_ref[...], h_new, preferred_element_type=jnp.float32)

    # Epilogue on the very last grid step: head MLP (Lin -> ReLU -> Dropout(eval)=id -> Lin).
    @pl.when((layer == num_layers - 1) & (tile == n_tiles - 1))
    def _final():
        y = jnp.dot(pooled_ref[...], fw1_ref[...], preferred_element_type=jnp.float32) + fb1_ref[...]
        y = jnp.maximum(y, 0.0)
        out = jnp.dot(y, fw2_ref[...], preferred_element_type=jnp.float32) + fb2_ref[...]
        out_ref[...] = out.astype(out_ref.dtype)


def gin_forward(x, a_hat, pool, layer_params, final_params, *, row_tile=None):
    """layer_params: list of (w1, b1, gamma_eff, beta_eff, w2, b2); final_params: (fw1, fb1, fw2, fb2)."""
    f32 = jnp.float32
    n_nodes, c_in = x.shape
    num_graphs = pool.shape[0]
    num_layers = len(layer_params)
    hidden = layer_params[0][0].shape[1]
    out_dim = final_params[2].shape[1]

    hp = _round_up(max(c_in, hidden), 128)            # lane-pad feature/hidden width
    if row_tile is None:
        n_pad = _round_up(n_nodes, 128)
        row_tile = next((t for t in (512, 256, 128) if n_pad % t == 0), n_pad)
    else:
        assert row_tile % 128 == 0, "row_tile must be a multiple of 128"
        n_pad = _round_up(n_nodes, row_tile)
    num_tiles = n_pad // row_tile

    # --- pad + cast operands (padded nodes/lanes are zero and never affect real outputs) ---
    x_p = jnp.zeros((n_pad, hp), f32).at[:n_nodes, :c_in].set(x.astype(f32))
    a_p = jnp.zeros((n_pad, n_pad), jnp.bfloat16).at[:n_nodes, :n_nodes].set(a_hat.astype(jnp.bfloat16))
    p_p = jnp.zeros((num_graphs, n_pad), f32).at[:, :n_nodes].set(pool.astype(f32))

    # --- fold eval-mode BatchNorm into Lin1, pad, and stack per-layer weights (layer = grid axis) ---
    w1s, b1s, w2s, b2s = [], [], [], []
    for (w1, b1, g_eff, b_eff, w2, b2) in layer_params:
        cin_l = w1.shape[0]
        w1f = (w1 * g_eff).astype(f32)
        b1f = (b1 * g_eff + b_eff).astype(f32)
        w1s.append(jnp.zeros((hp, hp), f32).at[:cin_l, :hidden].set(w1f))
        b1s.append(jnp.zeros((1, hp), f32).at[:, :hidden].set(b1f))
        w2s.append(jnp.zeros((hp, hp), f32).at[:hidden, :hidden].set(w2.astype(f32)))
        b2s.append(jnp.zeros((1, hp), f32).at[:, :hidden].set(b2.astype(f32)))
    w1_s, b1_s = jnp.stack(w1s), jnp.stack(b1s)       # (L, HP, HP), (L, 1, HP)
    w2_s, b2_s = jnp.stack(w2s), jnp.stack(b2s)

    fw1, fb1, fw2, fb2 = final_params
    fw1_p = jnp.zeros((hp, hp), f32).at[:hidden, :hidden].set(fw1.astype(f32))
    fb1_p = jnp.zeros((1, hp), f32).at[:, :hidden].set(fb1.astype(f32))
    fw2_p = jnp.zeros((hp, out_dim), f32).at[:hidden, :].set(fw2.astype(f32))
    fb2_p = fb2.astype(f32).reshape(1, out_dim)

    # --- grid / specs ---
    grid = (num_layers, num_tiles)
    in_specs = [
        pl.BlockSpec((n_pad, hp), lambda l, t: (0, 0)),              # x (fetched once, resident)
        pl.BlockSpec((row_tile, n_pad), lambda l, t: (t, 0)),        # A_hat row stripe (bf16, streamed)
        pl.BlockSpec((num_graphs, row_tile), lambda l, t: (0, t)),   # mean-pool stripe
        pl.BlockSpec((1, hp, hp), lambda l, t: (l, 0, 0)),           # w1 (BN folded)
        pl.BlockSpec((1, 1, hp), lambda l, t: (l, 0, 0)),            # b1 (BN folded)
        pl.BlockSpec((1, hp, hp), lambda l, t: (l, 0, 0)),           # w2
        pl.BlockSpec((1, 1, hp), lambda l, t: (l, 0, 0)),            # b2
        pl.BlockSpec((hp, hp), lambda l, t: (0, 0)),                 # head fw1
        pl.BlockSpec((1, hp), lambda l, t: (0, 0)),                  # head fb1
        pl.BlockSpec((hp, out_dim), lambda l, t: (0, 0)),            # head fw2
        pl.BlockSpec((1, out_dim), lambda l, t: (0, 0)),             # head fb2
    ]
    out_specs = pl.BlockSpec((num_graphs, out_dim), lambda l, t: (0, 0))
    scratch_shapes = [
        pltpu.VMEM((2 * n_pad, hp), f32),    # ping-pong node features (layer input / layer output)
        pltpu.VMEM((num_graphs, hp), f32),   # pooled accumulator
    ]

    # VMEM ceiling per generation: 64 MiB on v5e/v6e (128 MiB physical), ~48 MiB on v7x (64 MiB).
    try:
        vmem_cap = pltpu.get_tpu_info().vmem_capacity_bytes
    except Exception:
        vmem_cap = 128 * 1024 * 1024
    vmem_limit = int(min(64 * 1024 * 1024, (vmem_cap * 3) // 4))

    kernel = functools.partial(gin_kernel, num_layers, row_tile, n_pad)
    return pl.pallas_call(
        kernel,
        out_shape=jax.ShapeDtypeStruct((num_graphs, out_dim), f32),
        grid_spec=pltpu.PrefetchScalarGridSpec(
            num_scalar_prefetch=0,
            grid=grid,
            in_specs=in_specs,
            out_specs=out_specs,
            scratch_shapes=scratch_shapes,
        ),
        compiler_params=pltpu.CompilerParams(
            # Both axes sequential: layer l+1 reads the full VMEM-resident h written by ALL
            # row tiles of layer l, so the tile axis cannot be megacore-parallel in this design.
            dimension_semantics=("arbitrary", "arbitrary"),
            vmem_limit_bytes=vmem_limit,
        ),
    )(x_p, a_p, p_p, w1_s, b1_s, w2_s, b2_s, fw1_p, fb1_p, fw2_p, fb2_p)


def gin_reference(x, a_hat, pool, layer_params, final_params):
    """Pure-JAX f32 reference of the same forward pass (eval mode)."""
    h = x
    for (w1, b1, g_eff, b_eff, w2, b2) in layer_params:
        agg = a_hat @ h
        z = agg @ w1 + b1
        z = z * g_eff + b_eff
        z = jnp.maximum(z, 0.0)
        z = z @ w2 + b2
        h = jnp.maximum(z, 0.0)
    pooled = pool @ h
    fw1, fb1, fw2, fb2 = final_params
    y = jnp.maximum(pooled @ fw1 + fb1, 0.0)
    return y @ fw2 + fb2


if __name__ == "__main__":
    # small, deterministic problem
    N, C_IN, HIDDEN, OUT, N_GRAPHS, N_EDGES, N_LAYERS = 256, 8, 32, 4, 2, 512, 2

    key = jax.random.PRNGKey(0)
    keys = jax.random.split(key, 16)

    # node features
    x = jax.random.normal(keys[0], (N, C_IN), jnp.float32)

    # edge_index (2, E): row 0 = src, row 1 = dst (PyG source_to_target flow)
    src = jax.random.randint(keys[1], (N_EDGES,), 0, N)
    dst = jax.random.randint(keys[2], (N_EDGES,), 0, N)
    A = jnp.zeros((N, N), jnp.float32).at[dst, src].add(1.0)   # A[i, j] = # edges j -> i
    a_hat = A + jnp.eye(N, dtype=jnp.float32)                  # eps = 0 -> (I + A)

    # batch assignment + mean-pooling matrix
    batch = jnp.concatenate(
        [jnp.zeros(N // 2, jnp.int32), jnp.ones(N - N // 2, jnp.int32)])
    onehot = (jnp.arange(N_GRAPHS)[:, None] == batch[None, :]).astype(jnp.float32)
    counts = jnp.maximum(onehot.sum(axis=1, keepdims=True), 1.0)
    pool = onehot / counts                                     # (G, N)

    def linear_init(k, fan_in, fan_out):
        kw, kb = jax.random.split(k)
        lim = 1.0 / jnp.sqrt(jnp.float32(fan_in))
        w = jax.random.uniform(kw, (fan_in, fan_out), jnp.float32, -lim, lim)
        b = jax.random.uniform(kb, (1, fan_out), jnp.float32, -lim, lim)
        return w, b

    # GINConv layer parameters: MLP([cin, hidden, hidden]) with BatchNorm (eval running stats)
    layer_params = []
    ki = 3
    cin = C_IN
    for _ in range(N_LAYERS):
        w1, b1 = linear_init(keys[ki], cin, HIDDEN); ki += 1
        w2, b2 = linear_init(keys[ki], HIDDEN, HIDDEN); ki += 1
        gamma = jnp.ones((1, HIDDEN), jnp.float32)             # PyTorch BN defaults
        beta = jnp.zeros((1, HIDDEN), jnp.float32)
        r_mean = jnp.zeros((1, HIDDEN), jnp.float32)
        r_var = jnp.ones((1, HIDDEN), jnp.float32)
        g_eff = gamma / jnp.sqrt(r_var + 1e-5)
        b_eff = beta - r_mean * g_eff
        layer_params.append((w1, b1, g_eff, b_eff, w2, b2))
        cin = HIDDEN

    # final MLP([hidden, hidden, out], norm=None, dropout=0.4)
    fw1, fb1 = linear_init(keys[ki], HIDDEN, HIDDEN); ki += 1
    fw2, fb2 = linear_init(keys[ki], HIDDEN, OUT); ki += 1
    final_params = (fw1, fb1, fw2, fb2)

    out = gin_forward(x, a_hat, pool, layer_params, final_params, row_tile=128)
    jax.block_until_ready(out)
    assert out.shape == (N_GRAPHS, OUT)

    # correctness vs pure-JAX f32 reference (loose tol: bf16-streamed A_hat + matmul reassociation)
    with jax.default_matmul_precision("float32"):
        ref = gin_reference(x, a_hat, pool, layer_params, final_params)
    ref = jax.block_until_ready(ref)
    max_err = float(jnp.max(jnp.abs(out - ref)))
    assert max_err < 1e-1, f"kernel/reference mismatch: max abs err {max_err}"

    print("KERNEL_OK")
</pallas_src>

<mosaic_0001>
module attributes {stable_mosaic.version = 11 : i64} {
  func.func @gin_kernel(%arg0: i32, %arg1: i32, %arg2: memref<256x128xf32, #tpu.memory_space<vmem>>, %arg3: memref<128x256xbf16, #tpu.memory_space<vmem>>, %arg4: memref<2x128xf32, #tpu.memory_space<vmem>>, %arg5: memref<1x128x128xf32, #tpu.memory_space<vmem>>, %arg6: memref<1x1x128xf32, #tpu.memory_space<vmem>>, %arg7: memref<1x128x128xf32, #tpu.memory_space<vmem>>, %arg8: memref<1x1x128xf32, #tpu.memory_space<vmem>>, %arg9: memref<128x128xf32, #tpu.memory_space<vmem>>, %arg10: memref<1x128xf32, #tpu.memory_space<vmem>>, %arg11: memref<128x4xf32, #tpu.memory_space<vmem>>, %arg12: memref<1x4xf32, #tpu.memory_space<vmem>>, %arg13: memref<2x4xf32, #tpu.memory_space<vmem>>, %arg14: memref<512x128xf32, #tpu.memory_space<vmem>>, %arg15: memref<2x128xf32, #tpu.memory_space<vmem>>) attributes {dimension_semantics = [#tpu.dimension_semantics<arbitrary>, #tpu.dimension_semantics<arbitrary>], iteration_bounds = array<i64: 2, 2>, scalar_prefetch = 0 : i64, scratch_operands = 2 : i64, tpu.core_type = #tpu.core_type<tc>, window_params = [{pipeline_mode = #tpu.pipeline_mode<synchronous>, transform_indices = @transform_0, window_bounds = array<i64: 256, 128>}, {transform_indices = @transform_1, window_bounds = array<i64: 128, 256>}, {transform_indices = @transform_2, window_bounds = array<i64: 2, 128>}, {transform_indices = @transform_3, window_bounds = array<i64: 1, 128, 128>}, {transform_indices = @transform_4, window_bounds = array<i64: 1, 1, 128>}, {transform_indices = @transform_5, window_bounds = array<i64: 1, 128, 128>}, {transform_indices = @transform_6, window_bounds = array<i64: 1, 1, 128>}, {pipeline_mode = #tpu.pipeline_mode<synchronous>, transform_indices = @transform_7, window_bounds = array<i64: 128, 128>}, {pipeline_mode = #tpu.pipeline_mode<synchronous>, transform_indices = @transform_8, window_bounds = array<i64: 1, 128>}, {pipeline_mode = #tpu.pipeline_mode<synchronous>, transform_indices = @transform_9, window_bounds = array<i64: 128, 4>}, {pipeline_mode = #tpu.pipeline_mode<synchronous>, transform_indices = @transform_10, window_bounds = array<i64: 1, 4>}, {pipeline_mode = #tpu.pipeline_mode<synchronous>, transform_indices = @transform_11, window_bounds = array<i64: 2, 4>}]} {
    %c1_i32 = arith.constant 1 : i32
    %0 = arith.andi %arg0, %c1_i32 : i32
    %c128_i32 = arith.constant 128 : i32
    %1 = arith.muli %arg1, %c128_i32 : i32
    %2 = tpu.assume_multiple %1, 128 : i32
    %c256_i32 = arith.constant 256 : i32
    %3 = arith.muli %0, %c256_i32 : i32
    %4 = tpu.assume_multiple %3, 256 : i32
    %c1_i32_0 = arith.constant 1 : i32
    %5 = arith.subi %c1_i32_0, %0 : i32
    %c256_i32_1 = arith.constant 256 : i32
    %6 = arith.muli %5, %c256_i32_1 : i32
    %7 = tpu.assume_multiple %6, 256 : i32
    %c0_i32 = arith.constant 0 : i32
    %8 = arith.cmpi eq, %arg0, %c0_i32 : i32
    %c0_i32_2 = arith.constant 0 : i32
    %9 = arith.cmpi eq, %arg1, %c0_i32_2 : i32
    %10 = arith.andi %8, %9 : i1
    %11 = arith.extui %10 : i1 to i32
    %c0_i32_3 = arith.constant 0 : i32
    %12 = arith.cmpi ne, %11, %c0_i32_3 : i32
    scf.if %12 {
      %c0_28 = arith.constant 0 : index
      %c0_29 = arith.constant 0 : index
      %48 = vector.load %arg2[%c0_28, %c0_29] : memref<256x128xf32, #tpu.memory_space<vmem>>, vector<256x128xf32>
      %c0_30 = arith.constant 0 : index
      %c0_31 = arith.constant 0 : index
      %49 = vector.load %arg14[%c0_30, %c0_31] : memref<512x128xf32, #tpu.memory_space<vmem>>, vector<256x128xf32>
      tpu.vector_store %arg14[%c0_30, %c0_31], %48 {strides = array<i32>} : memref<512x128xf32, #tpu.memory_space<vmem>>, vector<256x128xf32>,
      %cst_32 = arith.constant 0.000000e+00 : f32
      %50 = vector.broadcast %cst_32 : f32 to vector<2x128xf32>
      %c0_33 = arith.constant 0 : index
      %c0_34 = arith.constant 0 : index
      %51 = vector.load %arg15[%c0_33, %c0_34] : memref<2x128xf32, #tpu.memory_space<vmem>>, vector<2x128xf32>
      tpu.vector_store %arg15[%c0_33, %c0_34], %50 {strides = array<i32>} : memref<2x128xf32, #tpu.memory_space<vmem>>, vector<2x128xf32>,
    } else {
    }
    %c0 = arith.constant 0 : index
    %c0_4 = arith.constant 0 : index
    %13 = vector.load %arg3[%c0, %c0_4] : memref<128x256xbf16, #tpu.memory_space<vmem>>, vector<128x256xbf16>
    %14 = arith.extf %13 : vector<128x256xbf16> to vector<128x256xf32>
    %15 = arith.index_cast %4 : i32 to index
    %c0_5 = arith.constant 0 : index
    %16 = vector.load %arg14[%15, %c0_5] : memref<512x128xf32, #tpu.memory_space<vmem>>, vector<256x128xf32>
    %cst = arith.constant dense<0.000000e+00> : vector<128x128xf32>
    %17 = tpu.matmul %14, %16, %cst {dimension_numbers = #tpu.dot_dimension_numbers<[1], [0], [0], [1], [0, 0, 1, 1], [], []>} : vector<128x256xf32>, vector<256x128xf32>, vector<128x128xf32> -> vector<128x128xf32>
    %c0_6 = arith.constant 0 : index
    %c0_7 = arith.constant 0 : index
    %c0_8 = arith.constant 0 : index
    %18 = vector.load %arg5[%c0_6, %c0_7, %c0_8] : memref<1x128x128xf32, #tpu.memory_space<vmem>>, vector<1x128x128xf32>
    %19 = vector.shape_cast %18 : vector<1x128x128xf32> to vector<128x128xf32>
    %cst_9 = arith.constant dense<0.000000e+00> : vector<128x128xf32>
    %20 = tpu.matmul %17, %19, %cst_9 {dimension_numbers = #tpu.dot_dimension_numbers<[1], [0], [0], [1], [0, 0, 1, 1], [], []>} : vector<128x128xf32>, vector<128x128xf32>, vector<128x128xf32> -> vector<128x128xf32>
    %c0_10 = arith.constant 0 : index
    %c0_11 = arith.constant 0 : index
    %c0_12 = arith.constant 0 : index
    %21 = vector.load %arg6[%c0_10, %c0_11, %c0_12] : memref<1x1x128xf32, #tpu.memory_space<vmem>>, vector<1x1x128xf32>
    %22 = vector.shape_cast %21 : vector<1x1x128xf32> to vector<1x128xf32>
    %23 = vector.broadcast %22 : vector<1x128xf32> to vector<128x128xf32>
    %24 = arith.addf %20, %23 : vector<128x128xf32>
    %cst_13 = arith.constant 0.000000e+00 : f32
    %25 = vector.broadcast %cst_13 : f32 to vector<128x128xf32>
    %26 = arith.maximumf %24, %25 : vector<128x128xf32>
    %c0_14 = arith.constant 0 : index
    %c0_15 = arith.constant 0 : index
    %c0_16 = arith.constant 0 : index
    %27 = vector.load %arg7[%c0_14, %c0_15, %c0_16] : memref<1x128x128xf32, #tpu.memory_space<vmem>>, vector<1x128x128xf32>
    %28 = vector.shape_cast %27 : vector<1x128x128xf32> to vector<128x128xf32>
    %cst_17 = arith.constant dense<0.000000e+00> : vector<128x128xf32>
    %29 = tpu.matmul %26, %28, %cst_17 {dimension_numbers = #tpu.dot_dimension_numbers<[1], [0], [0], [1], [0, 0, 1, 1], [], []>} : vector<128x128xf32>, vector<128x128xf32>, vector<128x128xf32> -> vector<128x128xf32>
    %c0_18 = arith.constant 0 : index
    %c0_19 = arith.constant 0 : index
    %c0_20 = arith.constant 0 : index
    %30 = vector.load %arg8[%c0_18, %c0_19, %c0_20] : memref<1x1x128xf32, #tpu.memory_space<vmem>>, vector<1x1x128xf32>
    %31 = vector.shape_cast %30 : vector<1x1x128xf32> to vector<1x128xf32>
    %32 = vector.broadcast %31 : vector<1x128xf32> to vector<128x128xf32>
    %33 = arith.addf %29, %32 : vector<128x128xf32>
    %cst_21 = arith.constant 0.000000e+00 : f32
    %34 = vector.broadcast %cst_21 : f32 to vector<128x128xf32>
    %35 = arith.maximumf %33, %34 : vector<128x128xf32>
    %36 = arith.addi %7, %2 : i32
    %37 = tpu.assume_multiple %36, 128 : i32
    %38 = arith.index_cast %37 : i32 to index
    %c0_22 = arith.constant 0 : index
    %39 = vector.load %arg14[%38, %c0_22] : memref<512x128xf32, #tpu.memory_space<vmem>>, vector<128x128xf32>
    tpu.vector_store %arg14[%38, %c0_22], %35 {strides = array<i32>} : memref<512x128xf32, #tpu.memory_space<vmem>>, vector<128x128xf32>,
    %c1_i32_23 = arith.constant 1 : i32
    %40 = arith.cmpi eq, %arg0, %c1_i32_23 : i32
    %41 = arith.extui %40 : i1 to i32
    %c0_i32_24 = arith.constant 0 : i32
    %42 = arith.cmpi ne, %41, %c0_i32_24 : i32
    scf.if %42 {
      %c0_28 = arith.constant 0 : index
      %c0_29 = arith.constant 0 : index
      %48 = vector.load %arg15[%c0_28, %c0_29] : memref<2x128xf32, #tpu.memory_space<vmem>>, vector<2x128xf32>
      %c0_30 = arith.constant 0 : index
      %c0_31 = arith.constant 0 : index
      %49 = vector.load %arg4[%c0_30, %c0_31] : memref<2x128xf32, #tpu.memory_space<vmem>>, vector<2x128xf32>
      %cst_32 = arith.constant dense<0.000000e+00> : vector<2x128xf32>
      %50 = tpu.matmul %49, %35, %cst_32 {dimension_numbers = #tpu.dot_dimension_numbers<[1], [0], [0], [1], [0, 0, 1, 1], [], []>} : vector<2x128xf32>, vector<128x128xf32>, vector<2x128xf32> -> vector<2x128xf32>
      %51 = arith.addf %48, %50 : vector<2x128xf32>
      %c0_33 = arith.constant 0 : index
      %c0_34 = arith.constant 0 : index
      %52 = vector.load %arg15[%c0_33, %c0_34] : memref<2x128xf32, #tpu.memory_space<vmem>>, vector<2x128xf32>
      tpu.vector_store %arg15[%c0_33, %c0_34], %51 {strides = array<i32>} : memref<2x128xf32, #tpu.memory_space<vmem>>, vector<2x128xf32>,
    } else {
    }
    %c1_i32_25 = arith.constant 1 : i32
    %43 = arith.cmpi eq, %arg0, %c1_i32_25 : i32
    %c1_i32_26 = arith.constant 1 : i32
    %44 = arith.cmpi eq, %arg1, %c1_i32_26 : i32
    %45 = arith.andi %43, %44 : i1
    %46 = arith.extui %45 : i1 to i32
    %c0_i32_27 = arith.constant 0 : i32
    %47 = arith.cmpi ne, %46, %c0_i32_27 : i32
    scf.if %47 {
      %c0_28 = arith.constant 0 : index
      %c0_29 = arith.constant 0 : index
      %48 = vector.load %arg15[%c0_28, %c0_29] : memref<2x128xf32, #tpu.memory_space<vmem>>, vector<2x128xf32>
      %c0_30 = arith.constant 0 : index
      %c0_31 = arith.constant 0 : index
      %49 = vector.load %arg9[%c0_30, %c0_31] : memref<128x128xf32, #tpu.memory_space<vmem>>, vector<128x128xf32>
      %cst_32 = arith.constant dense<0.000000e+00> : vector<2x128xf32>
      %50 = tpu.matmul %48, %49, %cst_32 {dimension_numbers = #tpu.dot_dimension_numbers<[1], [0], [0], [1], [0, 0, 1, 1], [], []>} : vector<2x128xf32>, vector<128x128xf32>, vector<2x128xf32> -> vector<2x128xf32>
      %c0_33 = arith.constant 0 : index
      %c0_34 = arith.constant 0 : index
      %51 = vector.load %arg10[%c0_33, %c0_34] : memref<1x128xf32, #tpu.memory_space<vmem>>, vector<1x128xf32>
      %52 = vector.broadcast %51 : vector<1x128xf32> to vector<2x128xf32>
      %53 = arith.addf %50, %52 : vector<2x128xf32>
      %cst_35 = arith.constant 0.000000e+00 : f32
      %54 = vector.broadcast %cst_35 : f32 to vector<2x128xf32>
      %55 = arith.maximumf %53, %54 : vector<2x128xf32>
      %c0_36 = arith.constant 0 : index
      %c0_37 = arith.constant 0 : index
      %56 = vector.load %arg11[%c0_36, %c0_37] : memref<128x4xf32, #tpu.memory_space<vmem>>, vector<128x4xf32>
      %cst_38 = arith.constant dense<0.000000e+00> : vector<2x4xf32>
      %57 = tpu.matmul %55, %56, %cst_38 {dimension_numbers = #tpu.dot_dimension_numbers<[1], [0], [0], [1], [0, 0, 1, 1], [], []>} : vector<2x128xf32>, vector<128x4xf32>, vector<2x4xf32> -> vector<2x4xf32>
      %c0_39 = arith.constant 0 : index
      %c0_40 = arith.constant 0 : index
      %58 = vector.load %arg12[%c0_39, %c0_40] : memref<1x4xf32, #tpu.memory_space<vmem>>, vector<1x4xf32>
      %59 = vector.broadcast %58 : vector<1x4xf32> to vector<2x4xf32>
      %60 = arith.addf %57, %59 : vector<2x4xf32>
      %c0_41 = arith.constant 0 : index
      %c0_42 = arith.constant 0 : index
      %61 = vector.load %arg13[%c0_41, %c0_42] : memref<2x4xf32, #tpu.memory_space<vmem>>, vector<2x4xf32>
      tpu.vector_store %arg13[%c0_41, %c0_42], %60 {strides = array<i32>} : memref<2x4xf32, #tpu.memory_space<vmem>>, vector<2x4xf32>,
    } else {
    }
    return
  }
  func.func @transform_0(%arg0: i32, %arg1: i32) -> (i32, i32) {
    %c0_i32 = arith.constant 0 : i32
    %c0_i32_0 = arith.constant 0 : i32
    %c0_i32_1 = arith.constant 0 : i32
    return %c0_i32, %c0_i32_0 : i32, i32
  }
  func.func @transform_1(%arg0: i32, %arg1: i32) -> (i32, i32) {
    %c0_i32 = arith.constant 0 : i32
    %c0_i32_0 = arith.constant 0 : i32
    return %arg1, %c0_i32 : i32, i32
  }
  func.func @transform_2(%arg0: i32, %arg1: i32) -> (i32, i32) {
    %c0_i32 = arith.constant 0 : i32
    %c0_i32_0 = arith.constant 0 : i32
    return %c0_i32, %arg1 : i32, i32
  }
  func.func @transform_3(%arg0: i32, %arg1: i32) -> (i32, i32, i32) {
    %c0_i32 = arith.constant 0 : i32
    %c0_i32_0 = arith.constant 0 : i32
    %c0_i32_1 = arith.constant 0 : i32
    return %arg0, %c0_i32, %c0_i32_0 : i32, i32, i32
  }
  func.func @transform_4(%arg0: i32, %arg1: i32) -> (i32, i32, i32) {
    %c0_i32 = arith.constant 0 : i32
    %c0_i32_0 = arith.constant 0 : i32
    %c0_i32_1 = arith.constant 0 : i32
    return %arg0, %c0_i32, %c0_i32_0 : i32, i32, i32
  }
  func.func @transform_5(%arg0: i32, %arg1: i32) -> (i32, i32, i32) {
    %c0_i32 = arith.constant 0 : i32
    %c0_i32_0 = arith.constant 0 : i32
    %c0_i32_1 = arith.constant 0 : i32
    return %arg0, %c0_i32, %c0_i32_0 : i32, i32, i32
  }
  func.func @transform_6(%arg0: i32, %arg1: i32) -> (i32, i32, i32) {
    %c0_i32 = arith.constant 0 : i32
    %c0_i32_0 = arith.constant 0 : i32
    %c0_i32_1 = arith.constant 0 : i32
    return %arg0, %c0_i32, %c0_i32_0 : i32, i32, i32
  }
  func.func @transform_7(%arg0: i32, %arg1: i32) -> (i32, i32) {
    %c0_i32 = arith.constant 0 : i32
    %c0_i32_0 = arith.constant 0 : i32
    %c0_i32_1 = arith.constant 0 : i32
    return %c0_i32, %c0_i32_0 : i32, i32
  }
  func.func @transform_8(%arg0: i32, %arg1: i32) -> (i32, i32) {
    %c0_i32 = arith.constant 0 : i32
    %c0_i32_0 = arith.constant 0 : i32
    %c0_i32_1 = arith.constant 0 : i32
    return %c0_i32, %c0_i32_0 : i32, i32
  }
  func.func @transform_9(%arg0: i32, %arg1: i32) -> (i32, i32) {
    %c0_i32 = arith.constant 0 : i32
    %c0_i32_0 = arith.constant 0 : i32
    %c0_i32_1 = arith.constant 0 : i32
    return %c0_i32, %c0_i32_0 : i32, i32
  }
  func.func @transform_10(%arg0: i32, %arg1: i32) -> (i32, i32) {
    %c0_i32 = arith.constant 0 : i32
    %c0_i32_0 = arith.constant 0 : i32
    %c0_i32_1 = arith.constant 0 : i32
    return %c0_i32, %c0_i32_0 : i32, i32
  }
  func.func @transform_11(%arg0: i32, %arg1: i32) -> (i32, i32) {
    %c0_i32 = arith.constant 0 : i32
    %c0_i32_0 = arith.constant 0 : i32
    %c0_i32_1 = arith.constant 0 : i32
    return %c0_i32, %c0_i32_0 : i32, i32
  }
}

</mosaic_0001>

<bundles_post_ra>
// kernel: tpu_custom_call.1
= control target key start
LH: loop header
LB: loop body
LE: loop exit
PB: predicated region body
PF: predicated region fallthrough
CT: control target
= control target key end

     0   :  { %s3925_s0 = inlined_call_operand.hbm [shape: f32[256,128], index: 0, kind: input, shape index: {}]   ;;  %s3926_s1 = inlined_call_operand.hbm [shape: bf16[256,256], index: 1, kind: input, shape index: {}]   ;;  %s3927_s2 = inlined_call_operand.hbm [shape: f32[2,256], index: 2, kind: input, shape index: {}]   ;;  %s3928_s3 = inlined_call_operand.hbm [shape: f32[2,128,128], index: 3, kind: input, shape index: {}]   ;;  %s3929_s4 = inlined_call_operand.hbm [shape: f32[2,1,128], index: 4, kind: input, shape index: {}]   ;;  %s3930_s5 = inlined_call_operand.hbm [shape: f32[2,128,128], index: 5, kind: input, shape index: {}]   ;;  %s3931_s6 = inlined_call_operand.hbm [shape: f32[2,1,128], index: 6, kind: input, shape index: {}]   ;;  %s3932_s7 = inlined_call_operand.hbm [shape: f32[128,128], index: 7, kind: input, shape index: {}]   ;;  %s3933_s8 = inlined_call_operand.hbm [shape: f32[1,128], index: 8, kind: input, shape index: {}]   ;;  %s3934_s9 = inlined_call_operand.hbm [shape: f32[128,4], index: 9, kind: input, shape index: {}]   ;;  %s3935_s10 = inlined_call_operand.hbm [shape: f32[1,4], index: 10, kind: input, shape index: {}]   ;;  %s3936_s11 = inlined_call_operand.hbm [shape: f32[2,4], index: 11, kind: output, shape index: {}]  }
   0x1   :  { %3979 = sst [smem:[#allocation41_spill]] %s3926_s1 }
   0x2   :  { %3980 = sst [smem:[#allocation42_spill]] %s3927_s2 }
   0x3   :  { %3981 = sst [smem:[#allocation43_spill]] %s3928_s3 }
   0x4   :  { %3982 = sst [smem:[#allocation44_spill]] %s3929_s4 }
   0x5   :  { %3983 = sst [smem:[#allocation45_spill]] %s3931_s6 }
   0x6   :  { %3984 = sst [smem:[#allocation46_spill]] %s3932_s7 }
   0x7   :  { %3985 = sst [smem:[#allocation47_spill]] %s3933_s8 }
   0x8   :  { %3986 = sst [smem:[#allocation48_spill]] %s3934_s9 }
   0x9   :  { %3987 = sst [smem:[#allocation49_spill]] %s3935_s10 }
   0xa   :  { %3988 = sst [smem:[#allocation50_spill]] %s3936_s11 }
   0xb   :  { %16 = vsyncpa [#allocation5], 0 }
   0xc   :  { %17 = vsyncpa [#allocation8], 0 }
   0xd   :  { %19 = vsyncpa [#allocation8 + $0x1], 0 }
   0xe   :  { %20 = vsyncpa [#allocation11], 0 }
   0xf   :  { %22 = vsyncpa [#allocation11 + $0x1], 0 }
  0x10   :  { %23 = vsyncpa [#allocation14], 0 }
  0x11   :  { %25 = vsyncpa [#allocation14 + $0x1], 0 }
  0x12   :  { %26 = vsyncpa [#allocation17], 0 }
  0x13   :  { %27 = vsyncpa [#allocation20], 0 }
  0x14   :  { %28 = vsyncpa [#allocation6], 0  ;;  %s3196_s17 = smov 0   ;;  %s3198_s18 = smov 0  }
  0x15   :  { %s3200_s19 = smov 0   ;;  %s3202_s20 = smov 0  }
  0x16   :  { %s3204_s21 = smov 0   ;;  %s3206_s22 = smov 0  }
  0x17   :  { %s3208_s23 = smov 0   ;;  %s3210_s24 = smov 0  }
  0x18   :  { %s3212_s25 = smov 0   ;;  %s3214_s26 = smov 0  }
  0x19   :  { %s3216_s27 = smov 0  }
  0x1a LB: > { %3989 = sst [smem:[#allocation30_spill]] %s3077_s18  ;;  %s3252_s28 = sadd.s32 4294967295, %s3113_s27   ;;  %s3113_s27 = sphi %s3216_s27, %s34_s27   ;;  %s3109_s26 = sphi %s3214_s26, %s4070_s26   ;;  %s3105_s25 = sphi %s3212_s25, %s4069_s25   ;;  %s3101_s24 = sphi %s3210_s24, %s4068_s24   ;;  %s3097_s23 = sphi %s3208_s23, %s4067_s23   ;;  %s3093_s22 = sphi %s3206_s22, %s4066_s22   ;;  %s3089_s21 = sphi %s3204_s21, %s4065_s21   ;;  %s3085_s20 = sphi %s3202_s20, %s4064_s20   ;;  %s3081_s19 = sphi %s3200_s19, %s4060_s19   ;;  %s3077_s18 = sphi %s3198_s18, %s4059_s18   ;;  %s3073_s17 = sphi %s3196_s17, %s4058_s17  }
  0x1b   : > { %3990 = sst [smem:[#allocation31_spill]] %s3081_s19  ;;  %p1839_p0 = scmp.ge.s32.totalorder %s3113_s27, 1 }
  0x1c   : > { %3991 = sst [smem:[#allocation32_spill]] %s3097_s23  ;;  %p3943_p1 = scmp.eq.s32.totalorder %s3252_s28, 0 }
  0x1d   : > { %3992 = sst [smem:[#allocation33_spill]] %s3101_s24  ;;  %p333_p2 = scmp.lt.s32.totalorder %s3113_s27, 5 }
  0x1e   : > { %3993 = sst [smem:[#allocation34_spill]] %s3113_s27  ;;  %s3115_s30 = smov [#allocation16]  }
  0x1f   : > { %p3257_p3 = pnand %p1839_p0, %p333_p2  ;;  %s358_s12 = sshll.u32 %s3115_s30, 4  ;;  %s359_s12 = int_to_ptr.vmem [resolvable:$true] %s358_s12 }
  0x20   : > { %s3116_s13 = smov [#allocation19]   ;;  %s3997_s7 = sld [smem:[#allocation46_spill]] }
  0x21   : > { %s3994_s29 = scalar_select %p3257_p3, 1, 0 }
  0x22   : > { %p2502_p4 = pneg %p3257_p3  ;;  %s382_s14 = sshll.u32 %s3116_s13, 4  ;;  %s3269_s14 = int_to_ptr.vmem [resolvable:$true] %s382_s14 }
  0x23   : > { %3995 = sst [smem:[#allocation35_spill]] %s3994_s29 }
  0x24   : > { %p3265_p5 = pnand %p2502_p4, %p3943_p1 }
  0x26   : > { %s3996_s15 = scalar_select %p3265_p5, 1, 0 }
  0x27   : > { %s2653_s23 = scalar_lea.hbm %s3997_s7, 2048  ;;  %p3279_p7 = pneg %p3265_p5 }
  0x28   : > { %p2654_p6 = scmp.ne.s32.totalorder %s3997_s7, %s2653_s23  ;;  %p2660_p10 = scmp.lt.u32.totalorder %s2653_s23, %s3997_s7 }
  0x29   : > { %s3998_s30 = scalar_select %p3279_p7, 1, 0 }
  0x2a   : > { %p2656_p8 = pnand %p3279_p7, %p2654_p6 }
  0x2c   : > { %p2657_p9 = pneg %p2656_p8 }
  0x2e   : > { %p2662_p11 = pnand %p2660_p10, %p2657_p9 }
  0x30   : > { %2665 = shalt.err (!%p2662_p11)
}
  0x31   : > { %s2666_s11 = scalar_lea.vmem %s359_s12, 2048  ;;  %p2674_p2 = scmp.lt.s32.totalorder %s359_s12, %s359_s12 }
  0x32   : > { %p2667_p12 = scmp.ne.s32.totalorder %s359_s12, %s2666_s11  ;;  %p2675_p4 = scmp.lt.s32.totalorder %s2666_s11, %s2666_s11 }
  0x34   : > { %p2669_p13 = pnand %p2667_p12, %p3279_p7  ;;  %p2676_p1 = por %p2675_p4, %p2674_p2 }
  0x36   : > { %p2670_p0 = pneg %p2669_p13 }
  0x38   : > { %p2677_p3 = pnand %p2676_p1, %p2670_p0 }
  0x3a   : > { %2680 = shalt.err (!%p2677_p3)
}
  0x3b   : > { %s3949_s6 = smov 128   ;;  %s3951_s24 = smov 8  }
  0x3c   : > { %2508 = dma.hbm_to_vmem [thread:$0]  (!%p3265_p5), %s3997_s7, 2048, %s359_s12, [#allocation17], %s3949_s6, %s3949_s6, %s3951_s24  }
  0x3d   : > { %s3999_s9 = sld [smem:[#allocation48_spill]] }
  0x43   : > { %s2681_s4 = scalar_lea.hbm %s3999_s9, 2048 }
  0x44   : > { %p2682_p1 = scmp.ne.s32.totalorder %s3999_s9, %s2681_s4  ;;  %p2688_p8 = scmp.lt.u32.totalorder %s2681_s4, %s3999_s9 }
  0x46   : > { %p2684_p3 = pnand %p2682_p1, %p3279_p7 }
  0x48   : > { %p2685_p6 = pneg %p2684_p3 }
  0x4a   : > { %p2690_p9 = pnand %p2688_p8, %p2685_p6 }
  0x4c   : > { %2693 = shalt.err (!%p2690_p9)
}
  0x4d   : > { %s2694_s12 = scalar_lea.vmem %s3269_s14, 2048  ;;  %p2702_p13 = scmp.lt.s32.totalorder %s3269_s14, %s3269_s14 }
  0x4e   : > { %p2695_p10 = scmp.ne.s32.totalorder %s3269_s14, %s2694_s12  ;;  %p2703_p0 = scmp.lt.s32.totalorder %s2694_s12, %s2694_s12 }
  0x50   : > { %p2697_p11 = pnand %p2695_p10, %p3279_p7  ;;  %p2704_p2 = por %p2703_p0, %p2702_p13 }
  0x52   : > { %p2698_p12 = pneg %p2697_p11 }
  0x54   : > { %p2705_p4 = pnand %p2704_p2, %p2698_p12 }
  0x56   : > { %2708 = shalt.err (!%p2705_p4)
}
  0x57   : > { %2514 = dma.hbm_to_vmem [thread:$0]  (!%p3265_p5), %s3999_s9, 2048, %s3269_s14, [#allocation20], %s3949_s6, %s3949_s6, %s3951_s24  }
  0x58   : > { %s43_s8 = sadd.s32 1, %s3105_s25  ;;  %s74_s10 = sadd.s32 1, %s3093_s22 }
  0x59   : > { %p3326_p1 = scmp.ge.s32.totalorder %s43_s8, 2  ;;  %p81_p3 = scmp.ne.s32.totalorder %s3093_s22, %s3089_s21 }
  0x5a   : > { %p3954_p6 = scmp.eq.s32.totalorder %s3113_s27, 0  ;;  %p87_p8 = scmp.ne.s32.totalorder %s3089_s21, %s3085_s20 }
  0x5b   : > { %s4072_s8 = smov (%p3326_p1, %s43_s8), 0  ;;  %p4003_p10 = scmp.eq.s32.totalorder %s3252_s28, 0 }
  0x5c   : > { %4001 = sst [smem:[#allocation36_spill]] %s4072_s8  ;;  %p3341_p9 = por %p3954_p6, %p81_p3 }
  0x5d   : > { %p3347_p11 = por %p4003_p10, %p87_p8  ;;  %s71_s16 = ssub.s32 %s3105_s25, %s4072_s8 }
  0x5e   : > { %p3953_p12 = scmp.lt.s32.totalorder %s3113_s27, 4  ;;  %p72_p13 = scmp.eq.s32.totalorder %s71_s16, 0 }
  0x5f   : > { %s4004_s29 = scalar_select %p3347_p11, 1, 0 }
  0x60   : > { %s3355_s13 = sand.u32 1, %s3113_s27   ;;  %s3956_s20 = sand.u32 1, %s3093_s22  }
  0x61   : > { %s3359_s11 = scalar_select %p72_p13, %s3093_s22, %s74_s10  }
  0x62   : > { %s1846_s12 = sshll.u32 %s3956_s20, 7  ;;  %s1883_s2 = sshll.u32 %s3105_s25, 11 }
  0x63   : > { %4005 = sst [smem:[#allocation37_spill]] %s3359_s11  ;;  %s4006_s1 = sld [smem:[#allocation41_spill]] }
  0x64   : > { %s411_s7 = scalar_lea.vmem [#allocation7], %s1846_s12  ;;  %p3373_p0 = pnand %p3953_p12, %p3341_p9 }
  0x65   : > { %s419_s16 = sshll.u32 %s411_s7, 4  ;;  %s3961_s10 = scalar_lea.sflag [#allocation8], %s3355_s13  ;;  %s3377_s16 = int_to_ptr.vmem [resolvable:$true] %s419_s16 }
  0x66   : > { %s4007_s9 = scalar_select %p3373_p0, 1, 0 }
  0x67   : > { %p3968_p4 = pneg %p3373_p0 }
  0x69   : > { %s3367_s24 = scalar_lea.hbm %s4006_s1, %s1883_s2  ;;  %s2714_s12 = scalar_lea.hbm %s4006_s1, 4096 }
  0x6a   : > { %s2709_s6 = scalar_lea.hbm %s3367_s24, 2048  ;;  %p2715_p9 = scmp.lt.u32.totalorder %s3367_s24, %s4006_s1 }
  0x6b   : > { %p2710_p2 = scmp.ne.s32.totalorder %s3367_s24, %s2709_s6  ;;  %p2716_p10 = scmp.lt.u32.totalorder %s2714_s12, %s2709_s6 }
  0x6c   : > { %p2718_p12 = scmp.lt.u32.totalorder %s2709_s6, %s3367_s24 }
  0x6d   : > { %p2712_p3 = pnand %p3968_p4, %p2710_p2  ;;  %p2717_p13 = por %p2716_p10, %p2715_p9 }
  0x6f   : > { %p2713_p8 = pneg %p2712_p3  ;;  %p2719_p6 = por %p2718_p12, %p2717_p13 }
  0x71   : > { %p2720_p11 = pnand %p2719_p6, %p2713_p8 }
  0x73   : > { %2723 = shalt.err (!%p2720_p11)
}
  0x74   : > { %s2724_s20 = scalar_lea.vmem %s3377_s16, 2048  ;;  %s3119_s7 = smov [#allocation7]  }
  0x75   : > { %p2725_p2 = scmp.ne.s32.totalorder %s3377_s16, %s2724_s20  ;;  %s2729_s14 = sshll.u32 %s3119_s7, 4  ;;  %s2730_s14 = int_to_ptr.vmem [resolvable:$false] %s2729_s14 }
  0x76   : > { %s2731_s2 = scalar_lea.vmem %s2730_s14, 4096  ;;  %p2732_p7 = scmp.lt.s32.totalorder %s3377_s16, %s2730_s14 }
  0x77   : > { %p2727_p3 = pnand %p2725_p2, %p3968_p4  ;;  %p2733_p9 = scmp.lt.s32.totalorder %s2731_s2, %s2724_s20 }
  0x79   : > { %p2728_p5 = pneg %p2727_p3  ;;  %p2734_p10 = por %p2733_p9, %p2732_p7 }
  0x7b   : > { %p2735_p12 = pnand %p2734_p10, %p2728_p5 }
  0x7d   : > { %2738 = shalt.err (!%p2735_p12)
}
  0x7e   : > { %s4008_s6 = smov 8   ;;  %s4009_s12 = smov 128  }
  0x7f   : > { %2521 = dma.hbm_to_vmem [thread:$0]  (!%p3373_p0), %s3367_s24, 2048, %s3377_s16, %s3961_s10, %s4009_s12, %s4009_s12, %s4008_s6  }
  0x80   : > { %s46_s20 = sadd.s32 1, %s3109_s26  ;;  %s126_s4 = sadd.s32 1, %s3081_s19 }
  0x81   : > { %s4074_s20 = smov (!%p3326_p1, %s46_s20), %s3109_s26  ;;  %p133_p5 = scmp.ne.s32.totalorder %s3081_s19, %s3077_s18 }
  0x82   : > { %p139_p7 = scmp.ne.s32.totalorder %s3077_s18, %s3073_s17  ;;  %p48_p6 = scmp.ge.s32.totalorder %s4074_s20, 2 }
  0x83   : > { %p4010_p11 = scmp.eq.s32.totalorder %s3113_s27, 0  ;;  %p4012_p13 = scmp.eq.s32.totalorder %s3252_s28, 0 }
  0x84   : > { %s4076_s20 = smov (%p48_p6, %s4074_s20), 0  ;;  %s3434_s24 = sand.u32 1, %s3081_s19  }
  0x85   : > { %p3421_p8 = por %p133_p5, %p4010_p11  ;;  %p3427_p2 = por %p139_p7, %p4012_p13 }
  0x86   : > { %4015 = sst [smem:[#allocation39_spill]] %s4076_s20  ;;  %s1884_s17 = sshll.u32 %s3109_s26, 11 }
  0x87   : > { %s4013_s14 = scalar_select %p3427_p2, 1, 0 }
  0x88   : > { %s123_s23 = ssub.s32 %s3109_s26, %s4076_s20  ;;  %s3967_s16 = sshll.u32 %s3434_s24, 7 }
  0x89   : > { %4014 = sst [smem:[#allocation38_spill]] %s4013_s14  ;;  %p124_p1 = scmp.eq.s32.totalorder %s123_s23, 0 }
  0x8a   : > { %s4016_s3 = sld [smem:[#allocation43_spill]]  ;;  %s451_s8 = scalar_lea.vmem [#allocation10], %s3967_s16 }
  0x8b   : > { %s458_s11 = sshll.u32 %s451_s8, 4  ;;  %p4018_p3 = scmp.lt.s32.totalorder %s3113_s27, 4  ;;  %s3450_s11 = int_to_ptr.vmem [resolvable:$true] %s458_s11 }
  0x8c   : > { %s3448_s14 = scalar_select %p124_p1, %s3081_s19, %s126_s4  }
  0x8d   : > { %p3456_p9 = pnand %p4018_p3, %p3421_p8  ;;  %s3463_s20 = scalar_lea.hbm %s3930_s5, %s1884_s17 }
  0x8e   : > { %4017 = sst [smem:[#allocation40_spill]] %s3448_s14  ;;  %s448_s18 = scalar_lea.sflag [#allocation11], %s3355_s13 }
  0x8f   : > { %s4019_s23 = scalar_select %p3456_p9, 1, 0 }
  0x90   : > { %s3443_s1 = scalar_lea.hbm %s4016_s3, %s1884_s17  ;;  %p3470_p12 = pneg %p3456_p9 }
  0x91   : > { %s2739_s16 = scalar_lea.hbm %s3443_s1, 2048  ;;  %s2744_s14 = scalar_lea.hbm %s4016_s3, 4096 }
  0x92   : > { %p2740_p10 = scmp.ne.s32.totalorder %s3443_s1, %s2739_s16  ;;  %p2745_p6 = scmp.lt.u32.totalorder %s3443_s1, %s4016_s3 }
  0x93   : > { %s4020_s8 = scalar_select %p3470_p12, 1, 0 }
  0x94   : > { %p2742_p5 = pnand %p3470_p12, %p2740_p10  ;;  %p2746_p11 = scmp.lt.u32.totalorder %s2744_s14, %s2739_s16 }
  0x95   : > { %p2748_p13 = scmp.lt.u32.totalorder %s2739_s16, %s3443_s1 }
  0x96   : > { %p2743_p7 = pneg %p2742_p5  ;;  %p2747_p8 = por %p2746_p11, %p2745_p6 }
  0x98   : > { %p2749_p1 = por %p2748_p13, %p2747_p8 }
  0x9a   : > { %p2750_p3 = pnand %p2749_p1, %p2743_p7 }
  0x9c   : > { %2753 = shalt.err (!%p2750_p3)
}
  0x9d   : > { %s2754_s17 = scalar_lea.vmem %s3450_s11, 2048  ;;  %s3120_s4 = smov [#allocation10]  }
  0x9e   : > { %p2755_p10 = scmp.ne.s32.totalorder %s3450_s11, %s2754_s17  ;;  %s2759_s7 = sshll.u32 %s3120_s4, 4  ;;  %s2760_s7 = int_to_ptr.vmem [resolvable:$false] %s2759_s7 }
  0x9f   : > { %s2761_s10 = scalar_lea.vmem %s2760_s7, 4096  ;;  %p2762_p2 = scmp.lt.s32.totalorder %s3450_s11, %s2760_s7 }
  0xa0   : > { %p2757_p5 = pnand %p2755_p10, %p3470_p12  ;;  %p2763_p0 = scmp.lt.s32.totalorder %s2761_s10, %s2754_s17 }
  0xa2   : > { %p2758_p4 = pneg %p2757_p5  ;;  %p2764_p6 = por %p2763_p0, %p2762_p2 }
  0xa4   : > { %p2765_p11 = pnand %p2764_p6, %p2758_p4 }
  0xa6   : > { %2768 = shalt.err (!%p2765_p11)
}
  0xa7   : > { %2527 = dma.hbm_to_vmem [thread:$0]  (!%p3456_p9), %s3443_s1, 2048, %s3450_s11, %s448_s18, %s4009_s12, %s4009_s12, %s4008_s6  }
  0xa8   : > { %s4021_s14 = sshll.u32 %s3434_s24, 7  ;;  %s3976_s17 = scalar_lea.sflag [#allocation14], %s3355_s13 }
  0xa9   : > { %s489_s16 = scalar_lea.vmem [#allocation13], %s4021_s14  ;;  %s2769_s4 = scalar_lea.hbm %s3463_s20, 2048 }
  0xaa   : > { %s496_s2 = sshll.u32 %s489_s16, 4  ;;  %p2770_p0 = scmp.ne.s32.totalorder %s3463_s20, %s2769_s4  ;;  %s3500_s2 = int_to_ptr.vmem [resolvable:$true] %s496_s2 }
  0xab   : > { %s2774_s3 = scalar_lea.hbm %s3930_s5, 4096  ;;  %p2775_p7 = scmp.lt.u32.totalorder %s3463_s20, %s3930_s5 }
  0xac   : > { %p2772_p4 = pnand %p2770_p0, %p3470_p12  ;;  %p2776_p8 = scmp.lt.u32.totalorder %s2774_s3, %s2769_s4 }
  0xad   : > { %p2778_p1 = scmp.lt.u32.totalorder %s2769_s4, %s3463_s20 }
  0xae   : > { %p2773_p2 = pneg %p2772_p4  ;;  %p2777_p13 = por %p2776_p8, %p2775_p7 }
  0xb0   : > { %p2779_p3 = por %p2778_p1, %p2777_p13 }
  0xb2   : > { %p2780_p10 = pnand %p2779_p3, %p2773_p2 }
  0xb4   : > { %2783 = shalt.err (!%p2780_p10)
}
  0xb5   : > { %s2784_s1 = scalar_lea.vmem %s3500_s2, 2048  ;;  %s3121_s11 = smov [#allocation13]  }
  0xb6   : > { %p2785_p5 = scmp.ne.s32.totalorder %s3500_s2, %s2784_s1  ;;  %s2789_s14 = sshll.u32 %s3121_s11, 4  ;;  %s2790_s14 = int_to_ptr.vmem [resolvable:$false] %s2789_s14 }
  0xb7   : > { %s2791_s19 = scalar_lea.vmem %s2790_s14, 4096  ;;  %p2792_p0 = scmp.lt.s32.totalorder %s3500_s2, %s2790_s14 }
  0xb8   : > { %p2787_p6 = pnand %p2785_p5, %p3470_p12  ;;  %p2793_p4 = scmp.lt.s32.totalorder %s2791_s19, %s2784_s1 }
  0xba   : > { %p2788_p11 = pneg %p2787_p6  ;;  %p2794_p7 = por %p2793_p4, %p2792_p0 }
  0xbc   : > { %p2795_p8 = pnand %p2794_p7, %p2788_p11 }
  0xbe   : > { %2798 = shalt.err (!%p2795_p8)
}
  0xbf   : > { %2533 = dma.hbm_to_vmem [thread:$0]  (!%p3456_p9), %s3463_s20, 2048, %s3500_s2, %s3976_s17, %s4009_s12, %s4009_s12, %s4008_s6  }
  0xc0   : > { %s3122_s3 = smov [#allocation4]   ;;  %s3123_s16 = smov [#allocation18]  }
  0xc1   : > { %s345_s27 = sshll.u32 %s3122_s3, 4  ;;  %s372_s4 = sshll.u32 %s3123_s16, 4  ;;  %s346_s27 = int_to_ptr.vmem [resolvable:$true] %s345_s27  ;;  %s3529_s4 = int_to_ptr.vmem [resolvable:$true] %s372_s4 }
  0xc2   : > { %s2799_s1 = scalar_lea.hbm %s3925_s0, 4096  ;;  %p4022_p13 = scmp.ne.s32.totalorder %s3998_s30, 0 }
  0xc3   : > { %p2800_p2 = scmp.ne.s32.totalorder %s3925_s0, %s2799_s1  ;;  %p2806_p10 = scmp.lt.u32.totalorder %s2799_s1, %s3925_s0 }
  0xc5   : > { %p2802_p1 = pnand %p2800_p2, %p4022_p13 }
  0xc7   : > { %p2803_p3 = pneg %p2802_p1 }
  0xc9   : > { %p2808_p5 = pnand %p2806_p10, %p2803_p3 }
  0xcb   : > { %2811 = shalt.err (!%p2808_p5)
}
  0xcc   : > { %s2812_s2 = scalar_lea.vmem %s346_s27, 4096  ;;  %p2820_p4 = scmp.lt.s32.totalorder %s346_s27, %s346_s27 }
  0xcd   : > { %p2813_p6 = scmp.ne.s32.totalorder %s346_s27, %s2812_s2  ;;  %p2821_p7 = scmp.lt.s32.totalorder %s2812_s2, %s2812_s2 }
  0xcf   : > { %p2815_p11 = pnand %p2813_p6, %p4022_p13  ;;  %p2822_p8 = por %p2821_p7, %p2820_p4 }
  0xd1   : > { %p2816_p0 = pneg %p2815_p11 }
  0xd3   : > { %p2823_p9 = pnand %p2822_p8, %p2816_p0 }
  0xd5   : > { %2826 = shalt.err (!%p2823_p9)
}
  0xd6   : > { %p4023_p2 = scmp.ne.s32.totalorder %s3996_s15, 0  ;;  %s4024_s1 = sld [smem:[#allocation47_spill]] }
  0xd8   : > { %2505 = dma.hbm_to_vmem [thread:$0]  (!%p4023_p2), %s3925_s0, 4096, %s346_s27, [#allocation5], %s4009_s12, %s4009_s12, %s4008_s6  }
  0xdc   : > { %s2827_s11 = scalar_lea.hbm %s4024_s1, 16 }
  0xdd   : > { %p2828_p1 = scmp.ne.s32.totalorder %s4024_s1, %s2827_s11  ;;  %p2834_p10 = scmp.lt.u32.totalorder %s2827_s11, %s4024_s1 }
  0xdf   : > { %p2830_p9 = pnand %p2828_p1, %p4022_p13 }
  0xe1   : > { %p2831_p3 = pneg %p2830_p9 }
  0xe3   : > { %p2836_p5 = pnand %p2834_p10, %p2831_p3 }
  0xe5   : > { %2839 = shalt.err (!%p2836_p5)
}
  0xe6   : > { %s2840_s6 = scalar_lea.vmem %s3529_s4, 16  ;;  %s2847_s12 = scalar_lea.vmem %s3529_s4, 32 }
  0xe7   : > { %p2841_p6 = scmp.ne.s32.totalorder %s3529_s4, %s2840_s6  ;;  %p2848_p4 = scmp.lt.s32.totalorder %s3529_s4, %s3529_s4 }
  0xe8   : > { %p2849_p7 = scmp.lt.s32.totalorder %s2847_s12, %s2840_s6 }
  0xe9   : > { %p2843_p11 = pnand %p2841_p6, %p4022_p13 }
  0xea   : > { %p2850_p8 = por %p2849_p7, %p2848_p4 }
  0xeb   : > { %p2844_p0 = pneg %p2843_p11 }
  0xed   : > { %p2851_p1 = pnand %p2850_p8, %p2844_p0 }
  0xef   : > { %2854 = shalt.err (!%p2851_p1)
}
  0xf0   : > { %2511 = dma.hbm_to_vmem [thread:$0]  (!%p4023_p2), %s4024_s1, 16, %s3529_s4, [#allocation17]  }
  0xf1   : > { %s4025_s16 = sand.u32 1, %s3093_s22   ;;  %s3124_s10 = smov [#allocation21]  }
  0xf2   : > { %s1850_s7 = sshll.u32 %s4025_s16, 1  ;;  %s396_s11 = sshll.u32 %s3124_s10, 4  ;;  %s397_s11 = int_to_ptr.vmem [resolvable:$true] %s396_s11 }
  0xf3   : > { %s1851_s14 = sshll.u32 %s3105_s25, 5  ;;  %s4026_s2 = sld [smem:[#allocation49_spill]] }
  0xf9   : > { %s2855_s6 = scalar_lea.hbm %s4026_s2, 16 }
  0xfa   : > { %p2856_p9 = scmp.ne.s32.totalorder %s4026_s2, %s2855_s6  ;;  %p2862_p5 = scmp.lt.u32.totalorder %s2855_s6, %s4026_s2 }
  0xfc   : > { %p2858_p3 = pnand %p2856_p9, %p4022_p13 }
  0xfe   : > { %p2859_p10 = pneg %p2858_p3 }
 0x100   : > { %p2864_p6 = pnand %p2862_p5, %p2859_p10 }
 0x102   : > { %2867 = shalt.err (!%p2864_p6)
}
 0x103   : > { %s2868_s4 = scalar_lea.vmem %s397_s11, 16  ;;  %s2875_s16 = scalar_lea.vmem %s397_s11, 32 }
 0x104   : > { %p2869_p11 = scmp.ne.s32.totalorder %s397_s11, %s2868_s4  ;;  %p2876_p7 = scmp.lt.s32.totalorder %s397_s11, %s397_s11 }
 0x105   : > { %p2877_p8 = scmp.lt.s32.totalorder %s2875_s16, %s2868_s4 }
 0x106   : > { %p2871_p0 = pnand %p2869_p11, %p4022_p13 }
 0x107   : > { %p2878_p1 = por %p2877_p8, %p2876_p7 }
 0x108   : > { %p2872_p4 = pneg %p2871_p0 }
 0x10a   : > { %p2879_p12 = pnand %p2878_p1, %p2872_p4 }
 0x10c   : > { %2882 = shalt.err (!%p2879_p12)
}
 0x10d   : > { %2517 = dma.hbm_to_vmem [thread:$0]  (!%p4023_p2), %s4026_s2, 16, %s397_s11, [#allocation20]  }
 0x10e   : > { %s4027_s6 = sld [smem:[#allocation42_spill]]  ;;  %s433_s30 = scalar_lea.vmem [#allocation9], %s1850_s7 }
 0x10f   : > { %s440_s27 = sshll.u32 %s433_s30, 4  ;;  %p4028_p13 = scmp.ne.s32.totalorder %s4007_s9, 0  ;;  %s441_s27 = int_to_ptr.vmem [resolvable:$true] %s440_s27 }
 0x111   : > { %p4029_p9 = pneg %p4028_p13 }
 0x114   : > { %s3600_s12 = scalar_lea.hbm %s4027_s6, %s1851_s14  ;;  %s2888_s4 = scalar_lea.hbm %s4027_s6, 64 }
 0x115   : > { %s2883_s3 = scalar_lea.hbm %s3600_s12, 32  ;;  %p2889_p2 = scmp.lt.u32.totalorder %s3600_s12, %s4027_s6 }
 0x116   : > { %p2884_p12 = scmp.ne.s32.totalorder %s3600_s12, %s2883_s3  ;;  %p2890_p5 = scmp.lt.u32.totalorder %s2888_s4, %s2883_s3 }
 0x117   : > { %p2892_p11 = scmp.lt.u32.totalorder %s2883_s3, %s3600_s12 }
 0x118   : > { %p2886_p3 = pnand %p2884_p12, %p4029_p9  ;;  %p2891_p6 = por %p2890_p5, %p2889_p2 }
 0x11a   : > { %p2887_p10 = pneg %p2886_p3  ;;  %p2893_p0 = por %p2892_p11, %p2891_p6 }
 0x11c   : > { %p2894_p4 = pnand %p2893_p0, %p2887_p10 }
 0x11e   : > { %2897 = shalt.err (!%p2894_p4)
}
 0x11f   : > { %s2898_s7 = scalar_lea.vmem %s441_s27, 32  ;;  %p4030_p8 = pmov %p4029_p9 }
 0x120   : > { %p2899_p7 = scmp.ne.s32.totalorder %s441_s27, %s2898_s7  ;;  %s3125_s17 = smov [#allocation9]  }
 0x121   : > { %s2903_s10 = sshll.u32 %s3125_s17, 4  ;;  %s2904_s10 = int_to_ptr.vmem [resolvable:$false] %s2903_s10 }
 0x122   : > { %p2901_p1 = pnand %p2899_p7, %p4030_p8  ;;  %s2905_s19 = scalar_lea.vmem %s2904_s10, 64 }
 0x123   : > { %p2906_p9 = scmp.lt.s32.totalorder %s441_s27, %s2904_s10  ;;  %p2907_p3 = scmp.lt.s32.totalorder %s2905_s19, %s2898_s7 }
 0x124   : > { %p2902_p12 = pneg %p2901_p1 }
 0x125   : > { %p2908_p2 = por %p2907_p3, %p2906_p9 }
 0x127   : > { %p2909_p5 = pnand %p2908_p2, %p2902_p12 }
 0x129   : > { %2912 = shalt.err (!%p2909_p5)
}
 0x12a   : > { %s4031_s20 = scalar_lea.sflag [#allocation8], %s3355_s13  ;;  %s1855_s30 = sshll.u32 %s3109_s26, 4 }
 0x12b   : > { %2524 = dma.hbm_to_vmem [thread:$0]  (!%p4028_p13), %s3600_s12, 32, %s441_s27, %s4031_s20  }
 0x12c   : > { %s471_s3 = scalar_lea.vmem [#allocation12], %s3434_s24  ;;  %s4032_s16 = sld [smem:[#allocation44_spill]] }
 0x12d   : > { %s478_s15 = sshll.u32 %s471_s3, 4  ;;  %p4033_p6 = scmp.ne.s32.totalorder %s4020_s8, 0  ;;  %s479_s15 = int_to_ptr.vmem [resolvable:$true] %s478_s15 }
 0x132   : > { %s476_s14 = scalar_lea.hbm %s4032_s16, %s1855_s30  ;;  %s2918_s10 = scalar_lea.hbm %s4032_s16, 32 }
 0x133   : > { %s2913_s7 = scalar_lea.hbm %s476_s14, 16  ;;  %p2919_p13 = scmp.lt.u32.totalorder %s476_s14, %s4032_s16 }
 0x134   : > { %p2914_p10 = scmp.ne.s32.totalorder %s476_s14, %s2913_s7  ;;  %p2920_p4 = scmp.lt.u32.totalorder %s2918_s10, %s2913_s7 }
 0x135   : > { %p2922_p8 = scmp.lt.u32.totalorder %s2913_s7, %s476_s14 }
 0x136   : > { %p2916_p11 = pnand %p2914_p10, %p4033_p6  ;;  %p2921_p7 = por %p2920_p4, %p2919_p13 }
 0x138   : > { %p2917_p0 = pneg %p2916_p11  ;;  %p2923_p1 = por %p2922_p8, %p2921_p7 }
 0x13a   : > { %p2924_p12 = pnand %p2923_p1, %p2917_p0 }
 0x13c   : > { %2927 = shalt.err (!%p2924_p12)
}
 0x13d   : > { %s2928_s27 = scalar_lea.vmem %s479_s15, 16  ;;  %s3126_s20 = smov [#allocation12]  }
 0x13e   : > { %p2929_p9 = scmp.ne.s32.totalorder %s479_s15, %s2928_s27  ;;  %s2933_s3 = sshll.u32 %s3126_s20, 4  ;;  %s2934_s3 = int_to_ptr.vmem [resolvable:$false] %s2933_s3 }
 0x13f   : > { %s2935_s11 = scalar_lea.vmem %s2934_s3, 32  ;;  %p2936_p5 = scmp.lt.s32.totalorder %s479_s15, %s2934_s3 }
 0x140   : > { %p2931_p3 = pnand %p2929_p9, %p4033_p6  ;;  %p2937_p10 = scmp.lt.s32.totalorder %s2935_s11, %s2928_s27 }
 0x142   : > { %p2932_p2 = pneg %p2931_p3  ;;  %p2938_p11 = por %p2937_p10, %p2936_p5 }
 0x144   : > { %p2939_p4 = pnand %p2938_p11, %p2932_p2 }
 0x146   : > { %2942 = shalt.err (!%p2939_p4)
}
 0x147   : > { %p4034_p13 = scmp.ne.s32.totalorder %s4019_s23, 0  ;;  %s4035_s9 = sld [smem:[#allocation45_spill]] }
 0x148   : > { %s509_s10 = scalar_lea.vmem [#allocation15], %s3434_s24 }
 0x149   : > { %2530 = dma.hbm_to_vmem [thread:$0]  (!%p4034_p13), %s476_s14, 16, %s479_s15, %s448_s18  }
 0x14a   : > { %s516_s19 = sshll.u32 %s509_s10, 4  ;;  %s517_s19 = int_to_ptr.vmem [resolvable:$true] %s516_s19 }
 0x14d   : > { %s3649_s17 = scalar_lea.hbm %s4035_s9, %s1855_s30  ;;  %s2948_s15 = scalar_lea.hbm %s4035_s9, 32 }
 0x14e   : > { %s2943_s12 = scalar_lea.hbm %s3649_s17, 16  ;;  %p2949_p1 = scmp.lt.u32.totalorder %s3649_s17, %s4035_s9 }
 0x14f   : > { %p2944_p0 = scmp.ne.s32.totalorder %s3649_s17, %s2943_s12  ;;  %p2950_p12 = scmp.lt.u32.totalorder %s2948_s15, %s2943_s12 }
 0x150   : > { %p2952_p3 = scmp.lt.u32.totalorder %s2943_s12, %s3649_s17 }
 0x151   : > { %p2946_p7 = pnand %p2944_p0, %p4033_p6  ;;  %p2951_p9 = por %p2950_p12, %p2949_p1 }
 0x153   : > { %p2947_p8 = pneg %p2946_p7  ;;  %p2953_p2 = por %p2952_p3, %p2951_p9 }
 0x155   : > { %p2954_p5 = pnand %p2953_p2, %p2947_p8 }
 0x157   : > { %2957 = shalt.err (!%p2954_p5)
}
 0x158   : > { %s2958_s24 = scalar_lea.vmem %s517_s19, 16  ;;  %s3127_s30 = smov [#allocation15]  }
 0x159   : > { %p2959_p10 = scmp.ne.s32.totalorder %s517_s19, %s2958_s24  ;;  %s2963_s3 = sshll.u32 %s3127_s30, 4  ;;  %s2964_s3 = int_to_ptr.vmem [resolvable:$false] %s2963_s3 }
 0x15a   : > { %s2965_s11 = scalar_lea.vmem %s2964_s3, 32  ;;  %p2966_p0 = scmp.lt.s32.totalorder %s517_s19, %s2964_s3 }
 0x15b   : > { %p2961_p11 = pnand %p2959_p10, %p4033_p6  ;;  %p2967_p7 = scmp.lt.s32.totalorder %s2965_s11, %s2958_s24 }
 0x15d   : > { %p2962_p4 = pneg %p2961_p11  ;;  %p2968_p13 = por %p2967_p7, %p2966_p0 }
 0x15f   : > { %p2969_p1 = pnand %p2968_p13, %p2962_p4 }
 0x161   : > { %2972 = shalt.err (!%p2969_p1)
}
 0x162   : > { %p4036_p12 = scmp.ne.s32.totalorder %s4019_s23, 0  ;;  %s4037_s4 = scalar_lea.sflag [#allocation14], %s3355_s13 }
 0x163   : > { %s4038_s7 = sld [smem:[#allocation35_spill]] }
 0x164   : > { %2536 = dma.hbm_to_vmem [thread:$0]  (!%p4036_p12), %s3649_s17, 16, %s517_s19, %s4037_s4  }
 0x169   : > { %p4039_p8 = scmp.ne.s32.totalorder %s4038_s7, 0 }
 0x16a   : > { %p4040_p6 = scmp.eq.s32.totalorder (!%p4039_p8), %s3252_s28, 0 }
 0x16b   : > { %525 = sbr.rel (%p4039_p8) target bundleno = 1901 (0x76d), region = 64 }
 0x172   : > { %3044 = dma.done.wait (%p4040_p6), [#allocation5], 4096   ;;  %p4041_p9 = pmov %p4040_p6 }
 0x173   : > { %s531_s8 = sand.u32 1, %s3252_s28   ;;  %s533_s10 = sand.u32 1, %s3089_s21  }
 0x174   : > { %3046 = vsyncadd (%p4041_p9), [#allocation5], 4294963200  ;;  %s1862_s12 = sshll.u32 %s533_s10, 7  ;;  %s532_s23 = scalar_lea.sflag [#allocation8], %s531_s8 }
 0x175   : > { %s3679_s27 = scalar_lea.vmem [#allocation7], %s1862_s12  ;;  %p4042_p13 = scmp.ne.s32.totalorder %s4004_s29, 0 }
 0x177   : > { %3048 = dma.done.wait (%p4042_p13), %s532_s23, 2080  }
 0x178   : > { %3050 = vsyncadd (%p4042_p13), %s532_s23, 4294965216  ;;  %s4043_s13 = sld [smem:[#allocation30_spill]]  ;;  %s4044_s17 = sld [smem:[#allocation38_spill]] }
 0x179   : > { %s3685_s19 = sshll.u32 %s533_s10, 1  ;;  %s550_s20 = scalar_lea.sflag [#allocation11], %s531_s8 }
 0x17a   : > { %s544_s14 = scalar_lea.vmem [#allocation9], %s3685_s19 }
 0x17e   : > { %s3688_s18 = sand.u32 1, %s4043_s13   ;;  %p4045_p3 = scmp.ne.s32.totalorder %s4044_s17, 0 }
 0x17f   : > { %s1864_s15 = sshll.u32 %s3688_s18, 7 }
 0x180   : > { %s3692_s24 = scalar_lea.vmem [#allocation10], %s1864_s15 }
 0x181   : > { %3052 = dma.done.wait (%p4045_p3), %s550_s20, 2064  }
 0x182   : > { %3054 = vsyncadd (%p4045_p3), %s550_s20, 4294965232  ;;  %s561_s29 = scalar_lea.vmem [#allocation12], %s3688_s18  ;;  %s567_s30 = scalar_lea.sflag [#allocation14], %s531_s8 }
 0x183   : > { %s3699_s3 = scalar_lea.vmem [#allocation13], %s1864_s15 }
 0x184   : > { %3056 = dma.done.wait (%p4045_p3), %s567_s30, 2064  }
 0x185   : > { %3058 = vsyncadd (%p4045_p3), %s567_s30, 4294965232  ;;  %s578_s11 = scalar_lea.vmem [#allocation15], %s3688_s18  ;;  %p4046_p2 = pmov %p4040_p6 }
 0x187   : > { %3060 = dma.done.wait (%p4046_p2), [#allocation17], 2064   ;;  %p4047_p5 = pmov %p4046_p2 }
 0x188   : > { %p4048_p10 = pmov %p4046_p2 }
 0x189   : > { %3062 = vsyncadd (%p4047_p5), [#allocation17], 4294965232 }
 0x18a   : > { %3064 = dma.done.wait (%p4048_p10), [#allocation20], 2064   ;;  %p4049_p11 = pmov %p4046_p2 }
 0x18b   : > { %s4050_s4 = sld [smem:[#allocation33_spill]]  ;;  %s4051_s7 = sld [smem:[#allocation32_spill]] }
 0x18c   : > { %3066 = vsyncadd (%p4049_p11), [#allocation20], 4294965232 }
 0x191   : > { %s652_s8 = sand.u32 1, %s4050_s4  ;;  %s1870_s10 = sshll.u32 %s4051_s7, 7 }
 0x192   : > { %s3716_s12 = sshll.u32 %s652_s8, 8  ;;  %s3718_s23 = ssub.s32 1, %s652_s8 }
 0x193   : > { %s1872_s13 = sshll.u32 %s3718_s23, 8  ;;  %p657_p4 = scmp.eq.s32.totalorder %s4050_s4, 0 }
 0x194   : > { %p658_p0 = scmp.eq.s32.totalorder %s4051_s7, 0 }
 0x196   : > { %p659_p7 = pnand %p658_p0, %p657_p4 }
 0x197   : > { %v663_v0 = vld [vmem:[#allocation4] sm:$0xff] (!%p659_p7)  ;;  %v664_v1 = vld [vmem:[#allocation4 + $0x8] sm:$0xff] (!%p659_p7)  ;;  %v665_v2 = vld [vmem:[#allocation4 + $0x10] sm:$0xff] (!%p659_p7)  ;;  %v3128_v6 = vmov (!%p659_p7), 0.0  }
 0x198   : > { %662 = sbr.rel (%p659_p7) target bundleno = 425 (0x1a9), region = 112  ;;  %695 = vst [vmem:[#allocation2] sm:$0xff] (!%p659_p7), %v663_v0  ;;  %696 = vst [vmem:[#allocation2 + $0x8] sm:$0xff] (!%p659_p7), %v664_v1  ;;  %v666_v3 = vld [vmem:[#allocation4 + $0x18] sm:$0xff] (!%p659_p7)  ;;  %v667_v4 = vld [vmem:[#allocation4 + $0x20] sm:$0xff] (!%p659_p7) }
 0x199   : > { %697 = vst [vmem:[#allocation2 + $0x10] sm:$0xff] (!%p659_p7), %v665_v2  ;;  %v668_v5 = vld [vmem:[#allocation4 + $0x28] sm:$0xff] (!%p659_p7)  ;;  %727 = vst [vmem:[#allocation3] sm:$0x3] (!%p659_p7), %v3128_v6  ;;  %v669_v7 = vld [vmem:[#allocation4 + $0x30] sm:$0xff] (!%p659_p7) }
 0x19a   : > { %698 = vst [vmem:[#allocation2 + $0x18] sm:$0xff] (!%p659_p7), %v666_v3  ;;  %699 = vst [vmem:[#allocation2 + $0x20] sm:$0xff] (!%p659_p7), %v667_v4  ;;  %v670_v8 = vld [vmem:[#allocation4 + $0x38] sm:$0xff] (!%p659_p7)  ;;  %v671_v9 = vld [vmem:[#allocation4 + $0x40] sm:$0xff] (!%p659_p7) }
 0x19b   : > { %700 = vst [vmem:[#allocation2 + $0x28] sm:$0xff] (!%p659_p7), %v668_v5  ;;  %701 = vst [vmem:[#allocation2 + $0x30] sm:$0xff] (!%p659_p7), %v669_v7  ;;  %v672_v10 = vld [vmem:[#allocation4 + $0x48] sm:$0xff] (!%p659_p7)  ;;  %v673_v11 = vld [vmem:[#allocation4 + $0x50] sm:$0xff] (!%p659_p7) }
 0x19c   : > { %702 = vst [vmem:[#allocation2 + $0x38] sm:$0xff] (!%p659_p7), %v670_v8  ;;  %703 = vst [vmem:[#allocation2 + $0x40] sm:$0xff] (!%p659_p7), %v671_v9  ;;  %v674_v12 = vld [vmem:[#allocation4 + $0x58] sm:$0xff] (!%p659_p7)  ;;  %v675_v13 = vld [vmem:[#allocation4 + $0x60] sm:$0xff] (!%p659_p7) }
 0x19d   : > { %704 = vst [vmem:[#allocation2 + $0x48] sm:$0xff] (!%p659_p7), %v672_v10  ;;  %705 = vst [vmem:[#allocation2 + $0x50] sm:$0xff] (!%p659_p7), %v673_v11  ;;  %v676_v14 = vld [vmem:[#allocation4 + $0x68] sm:$0xff] (!%p659_p7)  ;;  %v677_v15 = vld [vmem:[#allocation4 + $0x70] sm:$0xff] (!%p659_p7) }
 0x19e   : > { %706 = vst [vmem:[#allocation2 + $0x58] sm:$0xff] (!%p659_p7), %v674_v12  ;;  %707 = vst [vmem:[#allocation2 + $0x60] sm:$0xff] (!%p659_p7), %v675_v13  ;;  %v678_v16 = vld [vmem:[#allocation4 + $0x78] sm:$0xff] (!%p659_p7)  ;;  %v679_v17 = vld [vmem:[#allocation4 + $0x80] sm:$0xff] (!%p659_p7) }
 0x19f   : > { %708 = vst [vmem:[#allocation2 + $0x68] sm:$0xff] %v676_v14  ;;  %709 = vst [vmem:[#allocation2 + $0x70] sm:$0xff] %v677_v15  ;;  %v680_v18 = vld [vmem:[#allocation4 + $0x88] sm:$0xff]  ;;  %v681_v19 = vld [vmem:[#allocation4 + $0x90] sm:$0xff] }
 0x1a0   : > { %710 = vst [vmem:[#allocation2 + $0x78] sm:$0xff] %v678_v16  ;;  %711 = vst [vmem:[#allocation2 + $0x80] sm:$0xff] %v679_v17  ;;  %v682_v20 = vld [vmem:[#allocation4 + $0x98] sm:$0xff]  ;;  %v683_v21 = vld [vmem:[#allocation4 + $0xa0] sm:$0xff] }
 0x1a1   : > { %712 = vst [vmem:[#allocation2 + $0x88] sm:$0xff] %v680_v18  ;;  %713 = vst [vmem:[#allocation2 + $0x90] sm:$0xff] %v681_v19  ;;  %v684_v22 = vld [vmem:[#allocation4 + $0xa8] sm:$0xff]  ;;  %v685_v23 = vld [vmem:[#allocation4 + $0xb0] sm:$0xff] }
 0x1a2   : > { %714 = vst [vmem:[#allocation2 + $0x98] sm:$0xff] %v682_v20  ;;  %715 = vst [vmem:[#allocation2 + $0xa0] sm:$0xff] %v683_v21  ;;  %v686_v24 = vld [vmem:[#allocation4 + $0xb8] sm:$0xff]  ;;  %v687_v25 = vld [vmem:[#allocation4 + $0xc0] sm:$0xff] }
 0x1a3   : > { %716 = vst [vmem:[#allocation2 + $0xa8] sm:$0xff] %v684_v22  ;;  %717 = vst [vmem:[#allocation2 + $0xb0] sm:$0xff] %v685_v23  ;;  %v688_v26 = vld [vmem:[#allocation4 + $0xc8] sm:$0xff]  ;;  %v689_v27 = vld [vmem:[#allocation4 + $0xd0] sm:$0xff] }
 0x1a4   : > { %718 = vst [vmem:[#allocation2 + $0xb8] sm:$0xff] %v686_v24  ;;  %719 = vst [vmem:[#allocation2 + $0xc0] sm:$0xff] %v687_v25  ;;  %v690_v28 = vld [vmem:[#allocation4 + $0xd8] sm:$0xff]  ;;  %v691_v29 = vld [vmem:[#allocation4 + $0xe0] sm:$0xff] }
 0x1a5   : > { %720 = vst [vmem:[#allocation2 + $0xc8] sm:$0xff] %v688_v26  ;;  %721 = vst [vmem:[#allocation2 + $0xd0] sm:$0xff] %v689_v27  ;;  %v692_v30 = vld [vmem:[#allocation4 + $0xe8] sm:$0xff]  ;;  %v693_v31 = vld [vmem:[#allocation4 + $0xf0] sm:$0xff] }
 0x1a6   : > { %722 = vst [vmem:[#allocation2 + $0xd8] sm:$0xff] %v690_v28  ;;  %723 = vst [vmem:[#allocation2 + $0xe0] sm:$0xff] %v691_v29  ;;  %v694_v32 = vld [vmem:[#allocation4 + $0xf8] sm:$0xff] }
 0x1a7   : > { %724 = vst [vmem:[#allocation2 + $0xe8] sm:$0xff] %v692_v30  ;;  %725 = vst [vmem:[#allocation2 + $0xf0] sm:$0xff] %v693_v31 }
 0x1a8   : > { %726 = vst [vmem:[#allocation2 + $0xf8] sm:$0xff] %v694_v32 }
 0x1a9 PF: > { %v3724_v33 = vld [vmem:[%s3679_s27] sm:$0xff]  ;;  %s3727_s17 = scalar_lea.vmem [#allocation2], %s3716_s12  ;;  %v955_v3 = vld [vmem:[%s3692_s24 + $0x8] sm:$0xff]  ;;  %v956_v4 = vld [vmem:[%s3692_s24 + $0x10] sm:$0xff]  ;;  %s1322_s20 = sadd.s32 %s1872_s13, %s1870_s10 }
 0x1aa   : > { %v745_v37 = vunpack.c.h.bf16 %v3724_v33  ;;  %v954_v2 = vld [vmem:[%s3692_s24] sm:$0xff]  ;;  %v957_v6 = vld [vmem:[%s3692_s24 + $0x18] sm:$0xff]  ;;  %v959_v15 = vld [vmem:[%s3692_s24 + $0x28] sm:$0xff] }
 0x1ab   : > { %v2330_v12 = vpack.c.bf16 %v955_v3, %v954_v2  ;;  %v2334_v13 = vpack.c.bf16 %v957_v6, %v956_v4  ;;  %v958_v14 = vld [vmem:[%s3692_s24 + $0x20] sm:$0xff]  ;;  %v960_v23 = vld [vmem:[%s3692_s24 + $0x30] sm:$0xff]  ;;  %v961_v24 = vld [vmem:[%s3692_s24 + $0x38] sm:$0xff] }
 0x1ac   : > { %873 = vmatprep.mubr.f32.mxu0 %v745_v37  ;;  %v2338_v22 = vpack.c.bf16 %v959_v15, %v958_v14  ;;  %v2342_v29 = vpack.c.bf16 %v961_v24, %v960_v23  ;;  %v962_v30 = vld [vmem:[%s3692_s24 + $0x40] sm:$0xff]  ;;  %v963_v31 = vld [vmem:[%s3692_s24 + $0x48] sm:$0xff]  ;;  %v964_v37 = vld [vmem:[%s3692_s24 + $0x50] sm:$0xff] }
 0x1ad   : > { %2331 = vmatprep.subr.bf16.mxu1 %v2330_v12  ;;  %v739_v3 = vld [vmem:[%s3679_s27 + $0x58] sm:$0xff]  ;;  %v740_v6 = vld [vmem:[%s3679_s27 + $0x60] sm:$0xff] }
 0x1ae   : > { %2333 = vmatpush3.bf16.msra.mxu1 %v2330_v12  ;;  %v742_v12 = vld [vmem:[%s3679_s27 + $0x70] sm:$0xff]  ;;  %v743_v15 = vld [vmem:[%s3679_s27 + $0x78] sm:$0xff] }
 0x1af   : > { %v793_v34 = vld [vmem:[%s3727_s17 + $0x80] sm:$0xff]  ;;  %v794_v35 = vld [vmem:[%s3727_s17 + $0x88] sm:$0xff]  ;;  %v795_v40 = vld [vmem:[%s3727_s17 + $0x90] sm:$0xff]  ;;  %2335 = vmatprep.subr.bf16.mxu1 %v2334_v13  ;;  %v773_v14 = vunpack.c.h.bf16 %v742_v12 }
 0x1b0   : > { %v777_v36 = vld [vmem:[%s3727_s17] sm:$0xff]  ;;  %v2298_v38 = vpack.c.bf16 %v794_v35, %v793_v34  ;;  %v778_v39 = vld [vmem:[%s3727_s17 + $0x8] sm:$0xff]  ;;  %v796_v41 = vld [vmem:[%s3727_s17 + $0x98] sm:$0xff]  ;;  %v2346_v35 = vpack.c.bf16 %v963_v31, %v962_v30 }
 0x1b1   : > { %v2300_v42 = vpack.c.bf16 %v778_v39, %v777_v36  ;;  %v2302_v43 = vpack.c.bf16 %v796_v41, %v795_v40  ;;  %v779_v44 = vld [vmem:[%s3727_s17 + $0x10] sm:$0xff]  ;;  %v780_v45 = vld [vmem:[%s3727_s17 + $0x18] sm:$0xff]  ;;  %v797_v46 = vld [vmem:[%s3727_s17 + $0xa0] sm:$0xff]  ;;  %v744_v36 = vunpack.c.l.bf16 %v3724_v33 }
 0x1b2   : > { %2299 = vmatprep.subr.bf16.mxu0 %v2298_v38  ;;  %v798_v47 = vld [vmem:[%s3727_s17 + $0xa8] sm:$0xff]  ;;  %v2304_v48 = vpack.c.bf16 %v780_v45, %v779_v44  ;;  %v781_v50 = vld [vmem:[%s3727_s17 + $0x20] sm:$0xff]  ;;  %v799_v52 = vld [vmem:[%s3727_s17 + $0xb0] sm:$0xff]  ;;  %2337 = vmatpush3.bf16.msra.mxu1 %v2334_v13 }
 0x1b3   : > { %2301 = vmatpush3.bf16.msra.mxu0 %v2300_v42  ;;  %v2306_v49 = vpack.c.bf16 %v798_v47, %v797_v46  ;;  %v782_v51 = vld [vmem:[%s3727_s17 + $0x28] sm:$0xff]  ;;  %v800_v53 = vld [vmem:[%s3727_s17 + $0xb8] sm:$0xff]  ;;  %v783_v56 = vld [vmem:[%s3727_s17 + $0x30] sm:$0xff]  ;;  %2339 = vmatprep.subr.bf16.mxu1 %v2338_v22 }
 0x1b4   : > { %2303 = vmatprep.subr.bf16.mxu0 %v2302_v43  ;;  %v2308_v54 = vpack.c.bf16 %v782_v51, %v781_v50  ;;  %v2310_v55 = vpack.c.bf16 %v800_v53, %v799_v52  ;;  %v784_v57 = vld [vmem:[%s3727_s17 + $0x38] sm:$0xff]  ;;  %v801_v58 = vld [vmem:[%s3727_s17 + $0xc0] sm:$0xff]  ;;  %v802_v59 = vld [vmem:[%s3727_s17 + $0xc8] sm:$0xff] }
 0x1b5   : > { %v2312_v60 = vpack.c.bf16 %v784_v57, %v783_v56  ;;  %v2314_v61 = vpack.c.bf16 %v802_v59, %v801_v58  ;;  %v785_v62 = vld [vmem:[%s3727_s17 + $0x40] sm:$0xff]  ;;  %v786_v63 = vld [vmem:[%s3727_s17 + $0x48] sm:$0xff]  ;;  %v803_v0 = vld [vmem:[%s3727_s17 + $0xd0] sm:$0xff] }
 0x1b6   : > { %v804_v1 = vld [vmem:[%s3727_s17 + $0xd8] sm:$0xff]  ;;  %v2316_v5 = vpack.c.bf16 %v786_v63, %v785_v62  ;;  %v787_v8 = vld [vmem:[%s3727_s17 + $0x50] sm:$0xff]  ;;  %v805_v10 = vld [vmem:[%s3727_s17 + $0xe0] sm:$0xff]  ;;  %2341 = vmatpush3.bf16.msra.mxu1 %v2338_v22 }
 0x1b7   : > { %2305 = vmatpush3.bf16.msra.mxu0 %v2304_v48  ;;  %v2318_v7 = vpack.c.bf16 %v804_v1, %v803_v0  ;;  %v788_v9 = vld [vmem:[%s3727_s17 + $0x58] sm:$0xff]  ;;  %v806_v11 = vld [vmem:[%s3727_s17 + $0xe8] sm:$0xff]  ;;  %v789_v18 = vld [vmem:[%s3727_s17 + $0x60] sm:$0xff]  ;;  %2343 = vmatprep.subr.bf16.mxu1 %v2342_v29 }
 0x1b8   : > { %2307 = vmatprep.subr.bf16.mxu0 %v2306_v49  ;;  %v2320_v16 = vpack.c.bf16 %v788_v9, %v787_v8  ;;  %v2322_v17 = vpack.c.bf16 %v806_v11, %v805_v10  ;;  %v790_v19 = vld [vmem:[%s3727_s17 + $0x68] sm:$0xff]  ;;  %v807_v20 = vld [vmem:[%s3727_s17 + $0xf0] sm:$0xff]  ;;  %v808_v21 = vld [vmem:[%s3727_s17 + $0xf8] sm:$0xff]  ;;  %v769_v8 = vunpack.c.h.bf16 %v740_v6  ;;  %v768_v10 = vunpack.c.l.bf16 %v740_v6 }
 0x1b9   : > { %v2324_v25 = vpack.c.bf16 %v790_v19, %v789_v18  ;;  %v2326_v26 = vpack.c.bf16 %v808_v21, %v807_v20  ;;  %v791_v27 = vld [vmem:[%s3727_s17 + $0x70] sm:$0xff]  ;;  %v792_v28 = vld [vmem:[%s3727_s17 + $0x78] sm:$0xff]  ;;  %v732_v46 = vld [vmem:[%s3679_s27 + $0x20] sm:$0xff]  ;;  %v774_v18 = vunpack.c.l.bf16 %v743_v15 }
 0x1ba   : > { %v2328_v32 = vpack.c.bf16 %v792_v28, %v791_v27  ;;  %v729_v34 = vld [vmem:[%s3679_s27 + $0x8] sm:$0xff]  ;;  %v965_v38 = vld [vmem:[%s3692_s24 + $0x58] sm:$0xff]  ;;  %v730_v40 = vld [vmem:[%s3679_s27 + $0x10] sm:$0xff]  ;;  %2345 = vmatpush3.bf16.msra.mxu1 %v2342_v29  ;;  %v753_v48 = vunpack.c.h.bf16 %v732_v46  ;;  %v752_v50 = vunpack.c.l.bf16 %v732_v46 }
 0x1bb   : > { %2309 = vmatpush3.bf16.msra.mxu0 %v2308_v54  ;;  %v747_v39 = vunpack.c.h.bf16 %v729_v34  ;;  %2347 = vmatprep.subr.bf16.mxu1 %v2346_v35  ;;  %v2350_v41 = vpack.c.bf16 %v965_v38, %v964_v37  ;;  %v746_v42 = vunpack.c.l.bf16 %v729_v34  ;;  %v749_v43 = vunpack.c.h.bf16 %v730_v40  ;;  %v731_v44 = vld [vmem:[%s3679_s27 + $0x18] sm:$0xff]  ;;  %v733_v49 = vld [vmem:[%s3679_s27 + $0x28] sm:$0xff]  ;;  %v734_v52 = vld [vmem:[%s3679_s27 + $0x30] sm:$0xff] }
 0x1bc   : > { %2311 = vmatprep.subr.bf16.mxu0 %v2310_v55  ;;  %v748_v33 = vunpack.c.l.bf16 %v730_v40  ;;  %v751_v45 = vunpack.c.h.bf16 %v731_v44  ;;  %v750_v47 = vunpack.c.l.bf16 %v731_v44  ;;  %v755_v51 = vunpack.c.h.bf16 %v733_v49  ;;  %v735_v55 = vld [vmem:[%s3679_s27 + $0x38] sm:$0xff]  ;;  %v736_v58 = vld [vmem:[%s3679_s27 + $0x40] sm:$0xff]  ;;  %v738_v0 = vld [vmem:[%s3679_s27 + $0x50] sm:$0xff] }
 0x1bd   : > { %v754_v53 = vunpack.c.l.bf16 %v733_v49  ;;  %v757_v54 = vunpack.c.h.bf16 %v734_v52  ;;  %v756_v56 = vunpack.c.l.bf16 %v734_v52  ;;  %v759_v57 = vunpack.c.h.bf16 %v735_v55  ;;  %v741_v9 = vld [vmem:[%s3679_s27 + $0x68] sm:$0xff]  ;;  %v968_v22 = vld [vmem:[%s3692_s24 + $0x70] sm:$0xff]  ;;  %v969_v23 = vld [vmem:[%s3692_s24 + $0x78] sm:$0xff] }
 0x1be   : > { %2349 = vmatpush3.bf16.msra.mxu1 %v2346_v35  ;;  %v758_v59 = vunpack.c.l.bf16 %v735_v55  ;;  %v760_v62 = vunpack.c.l.bf16 %v736_v58  ;;  %v765_v2 = vunpack.c.h.bf16 %v738_v0  ;;  %v764_v4 = vunpack.c.l.bf16 %v738_v0  ;;  %v966_v19 = vld [vmem:[%s3692_s24 + $0x60] sm:$0xff]  ;;  %v967_v20 = vld [vmem:[%s3692_s24 + $0x68] sm:$0xff]  ;;  %v1140_v31 = vld [vmem:[%s3699_s3 + $0x10] sm:$0xff]  ;;  %s3825_s24 = scalar_lea.vmem [#allocation2], %s1322_s20 }
 0x1bf   : > { %2313 = vmatpush3.bf16.msra.mxu0 %v2312_v60  ;;  %2351 = vmatprep.subr.bf16.mxu1 %v2350_v41  ;;  %v761_v60 = vunpack.c.h.bf16 %v736_v58  ;;  %v771_v11 = vunpack.c.h.bf16 %v741_v9  ;;  %v770_v13 = vunpack.c.l.bf16 %v741_v9  ;;  %v2354_v21 = vpack.c.bf16 %v967_v20, %v966_v19  ;;  %v1142_v38 = vld [vmem:[%s3699_s3 + $0x20] sm:$0xff]  ;;  %v1144_v44 = vld [vmem:[%s3699_s3 + $0x30] sm:$0xff] }
 0x1c0   : > { %2315 = vmatprep.subr.bf16.mxu0 %v2314_v61  ;;  %v737_v61 = vld [vmem:[%s3679_s27 + $0x48] sm:$0xff]  ;;  %v2358_v24 = vpack.c.bf16 %v969_v23, %v968_v22  ;;  %v1148_v55 = vld [vmem:[%s3699_s3 + $0x50] sm:$0xff]  ;;  %s4052_s27 = sld [smem:[#allocation33_spill]] }
 0x1c1   : > { %v763_v63 = vunpack.c.h.bf16 %v737_v61  ;;  %v762_v1 = vunpack.c.l.bf16 %v737_v61  ;;  %v1146_v49 = vld [vmem:[%s3699_s3 + $0x40] sm:$0xff] }
 0x1c2   : > { %2353 = vmatpush3.bf16.msra.mxu1 %v2350_v41  ;;  %v1150_v61 = vld [vmem:[%s3699_s3 + $0x60] sm:$0xff] }
 0x1c3   : > { %2317 = vmatpush3.bf16.msra.mxu0 %v2316_v5  ;;  %v767_v5 = vunpack.c.h.bf16 %v739_v3  ;;  %2355 = vmatprep.subr.bf16.mxu1 %v2354_v21 }
 0x1c4   : > { %2319 = vmatprep.subr.bf16.mxu0 %v2318_v7  ;;  %v766_v7 = vunpack.c.l.bf16 %v739_v3 }
 0x1c6   : > { %2357 = vmatpush3.bf16.msra.mxu1 %v2354_v21  ;;  %p1340_p1 = scmp.eq.s32.totalorder %s4052_s27, 1  ;;  %p1875_p12 = scmp.ne.s32.totalorder %s4052_s27, 1 }
 0x1c7   : > { %2321 = vmatpush3.bf16.msra.mxu0 %v2320_v16  ;;  %v772_v16 = vunpack.c.l.bf16 %v742_v12  ;;  %2359 = vmatprep.subr.bf16.mxu1 %v2358_v24  ;;  %vm3130_vm0 = vmmov (!%p1875_p12), 0  }
 0x1c8   : > { %2323 = vmatprep.subr.bf16.mxu0 %v2322_v17  ;;  %v775_v17 = vunpack.c.h.bf16 %v743_v15 }
 0x1ca   : > { %2361 = vmatpush3.bf16.msra.mxu1 %v2358_v24 }
 0x1cb   : > { %2325 = vmatpush3.bf16.msra.mxu0 %v2324_v25  ;;  %v1138_v25 = vld [vmem:[%s3699_s3] sm:$0xff] }
 0x1cc   : > { %2327 = vmatprep.subr.bf16.mxu0 %v2326_v26  ;;  %v1139_v26 = vld [vmem:[%s3699_s3 + $0x8] sm:$0xff] }
 0x1cd   : > { %v2362_v27 = vpack.c.bf16 %v1139_v26, %v1138_v25 }
 0x1cf   : > { %2329 = vmatpush3.bf16.msra.mxu0 %v2328_v32  ;;  %2363 = vmatprep.subr.bf16.mxu1 %v2362_v27  ;;  %v1141_v32 = vld [vmem:[%s3699_s3 + $0x18] sm:$0xff] }
 0x1d0   : > { %v2366_v37 = vpack.c.bf16 %v1141_v32, %v1140_v31  ;;  %v1153_v31 = vld [vmem:[%s3699_s3 + $0x78] sm:$0xff] }
 0x1d2   : > { %874 = vmatmul.mubr.f32.vlgmr.msra.gmra.mrb[0].mxu0 %v744_v36 }
 0x1d3   : > { %878 = vmatprep.mubr.f32.mxu0 %v747_v39  ;;  %v1143_v39 = vld [vmem:[%s3699_s3 + $0x28] sm:$0xff] }
 0x1d6   : > { %879 = vmatmul.mubr.f32.gmra.mrb[2].mxu0 %v746_v42 }
 0x1d7   : > { %883 = vmatprep.mubr.f32.mxu0 %v749_v43  ;;  %v2370_v43 = vpack.c.bf16 %v1143_v39, %v1142_v38 }
 0x1da   : > { %884 = vmatmul.mubr.f32.gmra.mrb[4].mxu0 %v748_v33  ;;  %v1145_v33 = vld [vmem:[%s3699_s3 + $0x38] sm:$0xff] }
 0x1db   : > { %888 = vmatprep.mubr.f32.mxu0 %v751_v45 }
 0x1de   : > { %889 = vmatmul.mubr.f32.gmra.mrb[6].mxu0 %v750_v47 }
 0x1df   : > { %893 = vmatprep.mubr.f32.mxu0 %v753_v48  ;;  %v2374_v48 = vpack.c.bf16 %v1145_v33, %v1144_v44 }
 0x1e2   : > { %894 = vmatmul.mubr.f32.gmra.mrb[8].mxu0 %v752_v50  ;;  %v1147_v50 = vld [vmem:[%s3699_s3 + $0x48] sm:$0xff] }
 0x1e3   : > { %898 = vmatprep.mubr.f32.mxu0 %v755_v51 }
 0x1e6   : > { %899 = vmatmul.mubr.f32.gmra.mrb[10].mxu0 %v754_v53 }
 0x1e7   : > { %903 = vmatprep.mubr.f32.mxu0 %v757_v54  ;;  %v2378_v54 = vpack.c.bf16 %v1147_v50, %v1146_v49 }
 0x1ea   : > { %904 = vmatmul.mubr.f32.gmra.mrb[12].mxu0 %v756_v56  ;;  %v1149_v56 = vld [vmem:[%s3699_s3 + $0x58] sm:$0xff] }
 0x1eb   : > { %908 = vmatprep.mubr.f32.mxu0 %v759_v57 }
 0x1ee   : > { %909 = vmatmul.mubr.f32.gmra.mrb[14].mxu0 %v758_v59 }
 0x1ef   : > { %913 = vmatprep.mubr.f32.mxu0 %v761_v60  ;;  %v2382_v60 = vpack.c.bf16 %v1149_v56, %v1148_v55 }
 0x1f2   : > { %914 = vmatmul.mubr.f32.gmra.mrb[16].mxu0 %v760_v62  ;;  %v1151_v62 = vld [vmem:[%s3699_s3 + $0x68] sm:$0xff] }
 0x1f3   : > { %918 = vmatprep.mubr.f32.mxu0 %v763_v63 }
 0x1f6   : > { %919 = vmatmul.mubr.f32.gmra.mrb[18].mxu0 %v762_v1 }
 0x1f7   : > { %923 = vmatprep.mubr.f32.mxu0 %v765_v2  ;;  %v2386_v2 = vpack.c.bf16 %v1151_v62, %v1150_v61 }
 0x1fa   : > { %924 = vmatmul.mubr.f32.gmra.mrb[20].mxu0 %v764_v4 }
 0x1fb   : > { %928 = vmatprep.mubr.f32.mxu0 %v767_v5 }
 0x1fe   : > { %929 = vmatmul.mubr.f32.gmra.mrb[22].mxu0 %v766_v7 }
 0x1ff   : > { %933 = vmatprep.mubr.f32.mxu0 %v769_v8 }
 0x202   : > { %934 = vmatmul.mubr.f32.gmra.mrb[24].mxu0 %v768_v10 }
 0x203   : > { %938 = vmatprep.mubr.f32.mxu0 %v771_v11 }
 0x206   : > { %939 = vmatmul.mubr.f32.gmra.mrb[26].mxu0 %v770_v13 }
 0x207   : > { %943 = vmatprep.mubr.f32.mxu0 %v773_v14 }
 0x20a   : > { %944 = vmatmul.mubr.f32.gmra.mrb[28].mxu0 %v772_v16 }
 0x20b   : > { %948 = vmatprep.mubr.f32.mxu0 %v775_v17 }
 0x20e   : > { %949 = vmatmul.mubr.f32.gmra.mrb[30].mxu0 %v774_v18 }
 0x2a5   : > { %v1918_v28 = vpop.f32.mrb[0].mxu0 }
 0x2a6   : > { %v1919_v29 = vpop.f32.mrb[1].mxu0 }
 0x2a7   : > { %v1920_v30 = vadd.f32 %v1919_v29, %v1918_v28 }
 0x2a9   : > { %v1921_v34 = vpop.f32.mrb[2].mxu0  ;;  %2113 = vmatprep.mubr.f32.mxu1 %v1920_v30  ;;  %v1152_v30 = vld [vmem:[%s3699_s3 + $0x70] sm:$0xff] }
 0x2aa   : > { %v1922_v35 = vpop.f32.mrb[3].mxu0  ;;  %v2390_v32 = vpack.c.bf16 %v1153_v31, %v1152_v30 }
 0x2ab   : > { %v1923_v36 = vadd.f32 %v1922_v35, %v1921_v34  ;;  %v1873_v34 = vld [vmem:[%s561_s29] ss:$0 sm:$0xff] }
 0x2ad   : > { %v1924_v40 = vpop.f32.mrb[4].mxu0  ;;  %2114 = vmatmul.mubr.f32.vlgmr.msra.gmra.mrb[0].mxu1 %v1923_v36 }
 0x2ae   : > { %v1925_v41 = vpop.f32.mrb[5].mxu0  ;;  %2365 = vmatpush3.bf16.msra.mxu1 %v2362_v27 }
 0x2af   : > { %v1926_v42 = vadd.f32 %v1925_v41, %v1924_v40  ;;  %2367 = vmatprep.subr.bf16.mxu1 %v2366_v37 }
 0x2b1   : > { %v1927_v45 = vpop.f32.mrb[6].mxu0  ;;  %2116 = vmatprep.mubr.f32.mxu1 %v1926_v42 }
 0x2b2   : > { %v1928_v46 = vpop.f32.mrb[7].mxu0  ;;  %2369 = vmatpush3.bf16.msra.mxu1 %v2366_v37 }
 0x2b3   : > { %v1929_v47 = vadd.f32 %v1928_v46, %v1927_v45  ;;  %2371 = vmatprep.subr.bf16.mxu1 %v2370_v43 }
 0x2b5   : > { %v1930_v51 = vpop.f32.mrb[8].mxu0  ;;  %2117 = vmatmul.mubr.f32.gmra.mrb[2].mxu1 %v1929_v47 }
 0x2b6   : > { %v1931_v52 = vpop.f32.mrb[9].mxu0  ;;  %2373 = vmatpush3.bf16.msra.mxu1 %v2370_v43 }
 0x2b7   : > { %v1932_v53 = vadd.f32 %v1931_v52, %v1930_v51  ;;  %2375 = vmatprep.subr.bf16.mxu1 %v2374_v48 }
 0x2b9   : > { %v1933_v57 = vpop.f32.mrb[10].mxu0  ;;  %2119 = vmatprep.mubr.f32.mxu1 %v1932_v53 }
 0x2ba   : > { %v1934_v58 = vpop.f32.mrb[11].mxu0  ;;  %2377 = vmatpush3.bf16.msra.mxu1 %v2374_v48 }
 0x2bb   : > { %v1935_v59 = vadd.f32 %v1934_v58, %v1933_v57  ;;  %2379 = vmatprep.subr.bf16.mxu1 %v2378_v54 }
 0x2bd   : > { %v1936_v63 = vpop.f32.mrb[12].mxu0  ;;  %2120 = vmatmul.mubr.f32.gmra.mrb[4].mxu1 %v1935_v59 }
 0x2be   : > { %v1937_v0 = vpop.f32.mrb[13].mxu0  ;;  %2381 = vmatpush3.bf16.msra.mxu1 %v2378_v54 }
 0x2bf   : > { %v1938_v1 = vadd.f32 %v1937_v0, %v1936_v63  ;;  %2383 = vmatprep.subr.bf16.mxu1 %v2382_v60 }
 0x2c1   : > { %v1939_v3 = vpop.f32.mrb[14].mxu0  ;;  %2122 = vmatprep.mubr.f32.mxu1 %v1938_v1 }
 0x2c2   : > { %v1940_v4 = vpop.f32.mrb[15].mxu0  ;;  %2385 = vmatpush3.bf16.msra.mxu1 %v2382_v60 }
 0x2c3   : > { %v1941_v5 = vadd.f32 %v1940_v4, %v1939_v3  ;;  %2387 = vmatprep.subr.bf16.mxu1 %v2386_v2 }
 0x2c5   : > { %v1942_v6 = vpop.f32.mrb[16].mxu0  ;;  %2123 = vmatmul.mubr.f32.gmra.mrb[6].mxu1 %v1941_v5 }
 0x2c6   : > { %v1943_v7 = vpop.f32.mrb[17].mxu0  ;;  %2389 = vmatpush3.bf16.msra.mxu1 %v2386_v2 }
 0x2c7   : > { %v1944_v8 = vadd.f32 %v1943_v7, %v1942_v6  ;;  %2391 = vmatprep.subr.bf16.mxu1 %v2390_v32 }
 0x2c9   : > { %v1945_v9 = vpop.f32.mrb[18].mxu0  ;;  %2125 = vmatprep.mubr.f32.mxu1 %v1944_v8 }
 0x2ca   : > { %v1946_v10 = vpop.f32.mrb[19].mxu0  ;;  %2393 = vmatpush3.bf16.msra.mxu1 %v2390_v32 }
 0x2cb   : > { %v1947_v11 = vadd.f32 %v1946_v10, %v1945_v9 }
 0x2cd   : > { %v1948_v12 = vpop.f32.mrb[20].mxu0  ;;  %2126 = vmatmul.mubr.f32.gmra.mrb[8].mxu1 %v1947_v11 }
 0x2ce   : > { %v1949_v13 = vpop.f32.mrb[21].mxu0 }
 0x2cf   : > { %v1950_v14 = vadd.f32 %v1949_v13, %v1948_v12 }
 0x2d1   : > { %v1951_v15 = vpop.f32.mrb[22].mxu0  ;;  %2128 = vmatprep.mubr.f32.mxu1 %v1950_v14 }
 0x2d2   : > { %v1952_v16 = vpop.f32.mrb[23].mxu0 }
 0x2d3   : > { %v1953_v17 = vadd.f32 %v1952_v16, %v1951_v15 }
 0x2d5   : > { %v1954_v18 = vpop.f32.mrb[24].mxu0  ;;  %2129 = vmatmul.mubr.f32.gmra.mrb[10].mxu1 %v1953_v17 }
 0x2d6   : > { %v1955_v19 = vpop.f32.mrb[25].mxu0 }
 0x2d7   : > { %v1956_v20 = vadd.f32 %v1955_v19, %v1954_v18  ;;  %v1874_v18 = vld [vmem:[%s578_s11] ss:$0 sm:$0xff] }
 0x2d9   : > { %v1957_v21 = vpop.f32.mrb[26].mxu0  ;;  %2131 = vmatprep.mubr.f32.mxu1 %v1956_v20 }
 0x2da   : > { %v1958_v22 = vpop.f32.mrb[27].mxu0 }
 0x2db   : > { %v1959_v23 = vadd.f32 %v1958_v22, %v1957_v21 }
 0x2dd   : > { %v1960_v24 = vpop.f32.mrb[28].mxu0  ;;  %2132 = vmatmul.mubr.f32.gmra.mrb[12].mxu1 %v1959_v23 }
 0x2de   : > { %v1961_v25 = vpop.f32.mrb[29].mxu0 }
 0x2df   : > { %v1962_v26 = vadd.f32 %v1961_v25, %v1960_v24 }
 0x2e1   : > { %v1963_v27 = vpop.f32.mrb[30].mxu0  ;;  %2134 = vmatprep.mubr.f32.mxu1 %v1962_v26 }
 0x2e2   : > { %v1964_v28 = vpop.f32.mrb[31].mxu0 }
 0x2e3   : > { %v1965_v29 = vadd.f32 %v1964_v28, %v1963_v27 }
 0x2e5   : > { %2135 = vmatmul.mubr.f32.gmra.mrb[14].mxu1 %v1965_v29 }
 0x380   : > { %v2115_v35 = vpop.f32.mrb[0].mxu1 }
 0x381   : > { %v1049_v36 = vadd.f32 %v2115_v35, %v1873_v34  ;;  %v1043_v37 = vpop.f32.mrb[1].mxu1 }
 0x382   : > { %v1044_v38 = vadd.f32 %v1873_v34, %v1043_v37 }
 0x383   : > { %v1123_v40 = vmax.f32 %v1049_v36, 0.0 }
 0x384   : > { %v1122_v39 = vmax.f32 %v1044_v38, 0.0 }
 0x386   : > { %2169 = vmatprep.mubr.f32.mxu1 %v1122_v39 }
 0x387   : > { %2170 = vmatmul.mubr.f32.vlgmr.msra.gmra.mrb[16].mxu1 %v1123_v40 }
 0x388   : > { %v2118_v41 = vpop.f32.mrb[2].mxu1 }
 0x389   : > { %v1059_v42 = vadd.f32 %v2118_v41, %v1873_v34  ;;  %v1053_v43 = vpop.f32.mrb[3].mxu1 }
 0x38a   : > { %v1054_v44 = vadd.f32 %v1873_v34, %v1053_v43 }
 0x38b   : > { %v1125_v45 = vmax.f32 %v1059_v42, 0.0 }
 0x38c   : > { %v1124_v33 = vmax.f32 %v1054_v44, 0.0 }
 0x38e   : > { %2172 = vmatprep.mubr.f32.mxu1 %v1124_v33 }
 0x38f   : > { %2173 = vmatmul.mubr.f32.gmra.mrb[18].mxu1 %v1125_v45 }
 0x390   : > { %v2121_v46 = vpop.f32.mrb[4].mxu1 }
 0x391   : > { %v1069_v47 = vadd.f32 %v2121_v46, %v1873_v34  ;;  %v1063_v48 = vpop.f32.mrb[5].mxu1 }
 0x392   : > { %v1064_v49 = vadd.f32 %v1873_v34, %v1063_v48 }
 0x393   : > { %v1127_v51 = vmax.f32 %v1069_v47, 0.0 }
 0x394   : > { %v1126_v50 = vmax.f32 %v1064_v49, 0.0 }
 0x396   : > { %2175 = vmatprep.mubr.f32.mxu1 %v1126_v50 }
 0x397   : > { %2176 = vmatmul.mubr.f32.gmra.mrb[20].mxu1 %v1127_v51 }
 0x398   : > { %v2124_v52 = vpop.f32.mrb[6].mxu1 }
 0x399   : > { %v1079_v53 = vadd.f32 %v2124_v52, %v1873_v34  ;;  %v1073_v54 = vpop.f32.mrb[7].mxu1 }
 0x39a   : > { %v1074_v55 = vadd.f32 %v1873_v34, %v1073_v54 }
 0x39b   : > { %v1129_v57 = vmax.f32 %v1079_v53, 0.0 }
 0x39c   : > { %v1128_v56 = vmax.f32 %v1074_v55, 0.0 }
 0x39e   : > { %2178 = vmatprep.mubr.f32.mxu1 %v1128_v56 }
 0x39f   : > { %2179 = vmatmul.mubr.f32.gmra.mrb[22].mxu1 %v1129_v57 }
 0x3a0   : > { %v2127_v58 = vpop.f32.mrb[8].mxu1 }
 0x3a1   : > { %v1089_v59 = vadd.f32 %v2127_v58, %v1873_v34  ;;  %v1083_v60 = vpop.f32.mrb[9].mxu1 }
 0x3a2   : > { %v1084_v61 = vadd.f32 %v1873_v34, %v1083_v60 }
 0x3a3   : > { %v1131_v63 = vmax.f32 %v1089_v59, 0.0 }
 0x3a4   : > { %v1130_v62 = vmax.f32 %v1084_v61, 0.0 }
 0x3a6   : > { %2181 = vmatprep.mubr.f32.mxu1 %v1130_v62 }
 0x3a7   : > { %2182 = vmatmul.mubr.f32.gmra.mrb[24].mxu1 %v1131_v63 }
 0x3a8   : > { %v2130_v0 = vpop.f32.mrb[10].mxu1 }
 0x3a9   : > { %v1099_v1 = vadd.f32 %v2130_v0, %v1873_v34  ;;  %v1093_v2 = vpop.f32.mrb[11].mxu1 }
 0x3aa   : > { %v1094_v3 = vadd.f32 %v1873_v34, %v1093_v2 }
 0x3ab   : > { %v1133_v5 = vmax.f32 %v1099_v1, 0.0 }
 0x3ac   : > { %v1132_v4 = vmax.f32 %v1094_v3, 0.0 }
 0x3ae   : > { %2184 = vmatprep.mubr.f32.mxu1 %v1132_v4  ;;  %v3129_v4 = vmov (!%p1875_p12), 0.0|0.0  }
 0x3af   : > { %2185 = vmatmul.mubr.f32.gmra.mrb[26].mxu1 %v1133_v5  ;;  %2394 = vmatprep.subr.bf16.mxu0 (!%p1875_p12), %v3129_v4 }
 0x3b0   : > { %v2133_v6 = vpop.f32.mrb[12].mxu1 }
 0x3b1   : > { %v1109_v7 = vadd.f32 %v2133_v6, %v1873_v34  ;;  %v1103_v8 = vpop.f32.mrb[13].mxu1  ;;  %v3131_v6 = vmov (!%p1875_p12), 0.0  }
 0x3b2   : > { %v1104_v9 = vadd.f32 %v1873_v34, %v1103_v8  ;;  %2225 = vmatprep.mubr.msk.f32.mxu0 (!%p1875_p12), %vm3130_vm0, %v3131_v6 }
 0x3b3   : > { %v1135_v11 = vmax.f32 %v1109_v7, 0.0 }
 0x3b4   : > { %v1134_v10 = vmax.f32 %v1104_v9, 0.0 }
 0x3b6   : > { %2187 = vmatprep.mubr.f32.mxu1 %v1134_v10 }
 0x3b7   : > { %2188 = vmatmul.mubr.f32.gmra.mrb[28].mxu1 %v1135_v11 }
 0x3b8   : > { %v2136_v12 = vpop.f32.mrb[14].mxu1 }
 0x3b9   : > { %v1119_v13 = vadd.f32 %v2136_v12, %v1873_v34  ;;  %v1113_v14 = vpop.f32.mrb[15].mxu1 }
 0x3ba   : > { %v1114_v15 = vadd.f32 %v1873_v34, %v1113_v14  ;;  %v1344_v14 = vld [vmem:[#allocation3] sm:$0x3] (!%p1875_p12) }
 0x3bb   : > { %v1137_v17 = vmax.f32 %v1119_v13, 0.0  ;;  %v1345_v13 = vld [vmem:[%s544_s14] sm:$0x3] (!%p1875_p12) }
 0x3bc   : > { %v1136_v16 = vmax.f32 %v1114_v15, 0.0 }
 0x3be   : > { %2190 = vmatprep.mubr.f32.mxu1 %v1136_v16 }
 0x3bf   : > { %2191 = vmatmul.mubr.f32.gmra.mrb[30].mxu1 %v1137_v17 }
 0x45a   : > { %v2171_v19 = vpop.f32.mrb[16].mxu1 }
 0x45b   : > { %v3819_v20 = vadd.f32 %v2171_v19, %v1874_v18  ;;  %v1227_v21 = vpop.f32.mrb[17].mxu1 }
 0x45c   : > { %v3821_v22 = vadd.f32 %v1874_v18, %v1227_v21 }
 0x45d   : > { %v1307_v23 = vmax.f32 %v3819_v20, 0.0 }
 0x45e   : > { %v1306_v24 = vmax.f32 %v3821_v22, 0.0 }
 0x45f   : > { %1325 = vst [vmem:[%s3825_s24 + $0x8] sm:$0xff] %v1307_v23 }
 0x460   : > { %1324 = vst [vmem:[%s3825_s24] sm:$0xff] %v1306_v24  ;;  %v2395_v3 = vpack.c.bf16 (!%p1875_p12), %v1307_v23, %v1306_v24 }
 0x462   : > { %v2174_v25 = vpop.f32.mrb[18].mxu1  ;;  %2396 = vmatpush3.bf16.msra.mxu0 (!%p1875_p12), %v2395_v3 }
 0x463   : > { %v1243_v26 = vadd.f32 %v2174_v25, %v1874_v18  ;;  %v1237_v27 = vpop.f32.mrb[19].mxu1  ;;  %2397 = vmatprep.subr.bf16.mxu0 (!%p1875_p12), %v3129_v4 }
 0x464   : > { %v1238_v28 = vadd.f32 %v1874_v18, %v1237_v27 }
 0x465   : > { %v1309_v29 = vmax.f32 %v1243_v26, 0.0 }
 0x466   : > { %v1308_v30 = vmax.f32 %v1238_v28, 0.0 }
 0x467   : > { %1327 = vst [vmem:[%s3825_s24 + $0x18] sm:$0xff] %v1309_v29 }
 0x468   : > { %1326 = vst [vmem:[%s3825_s24 + $0x10] sm:$0xff] %v1308_v30  ;;  %v2398_v5 = vpack.c.bf16 (!%p1875_p12), %v1309_v29, %v1308_v30 }
 0x46a   : > { %v2177_v31 = vpop.f32.mrb[20].mxu1  ;;  %2399 = vmatpush3.bf16.msra.mxu0 (!%p1875_p12), %v2398_v5 }
 0x46b   : > { %v1253_v32 = vadd.f32 %v2177_v31, %v1874_v18  ;;  %v1247_v34 = vpop.f32.mrb[21].mxu1  ;;  %2400 = vmatprep.subr.bf16.mxu0 (!%p1875_p12), %v3129_v4 }
 0x46c   : > { %v1248_v35 = vadd.f32 %v1874_v18, %v1247_v34 }
 0x46d   : > { %v1311_v36 = vmax.f32 %v1253_v32, 0.0 }
 0x46e   : > { %v1310_v37 = vmax.f32 %v1248_v35, 0.0 }
 0x46f   : > { %1329 = vst [vmem:[%s3825_s24 + $0x28] sm:$0xff] %v1311_v36 }
 0x470   : > { %1328 = vst [vmem:[%s3825_s24 + $0x20] sm:$0xff] %v1310_v37  ;;  %v2401_v7 = vpack.c.bf16 (!%p1875_p12), %v1311_v36, %v1310_v37 }
 0x472   : > { %v2180_v38 = vpop.f32.mrb[22].mxu1  ;;  %2402 = vmatpush3.bf16.msra.mxu0 (!%p1875_p12), %v2401_v7 }
 0x473   : > { %v1263_v39 = vadd.f32 %v2180_v38, %v1874_v18  ;;  %v1257_v40 = vpop.f32.mrb[23].mxu1  ;;  %2403 = vmatprep.subr.bf16.mxu0 (!%p1875_p12), %v3129_v4 }
 0x474   : > { %v1258_v41 = vadd.f32 %v1874_v18, %v1257_v40 }
 0x475   : > { %v1313_v42 = vmax.f32 %v1263_v39, 0.0 }
 0x476   : > { %v1312_v43 = vmax.f32 %v1258_v41, 0.0 }
 0x477   : > { %1331 = vst [vmem:[%s3825_s24 + $0x38] sm:$0xff] %v1313_v42 }
 0x478   : > { %1330 = vst [vmem:[%s3825_s24 + $0x30] sm:$0xff] %v1312_v43  ;;  %v2404_v8 = vpack.c.bf16 (!%p1875_p12), %v1313_v42, %v1312_v43 }
 0x47a   : > { %v2183_v44 = vpop.f32.mrb[24].mxu1  ;;  %2405 = vmatpush3.bf16.msra.mxu0 (!%p1875_p12), %v2404_v8 }
 0x47b   : > { %v1273_v33 = vadd.f32 %v2183_v44, %v1874_v18  ;;  %v1267_v45 = vpop.f32.mrb[25].mxu1  ;;  %2406 = vmatprep.subr.bf16.mxu0 (!%p1875_p12), %v3129_v4 }
 0x47c   : > { %v1268_v46 = vadd.f32 %v1874_v18, %v1267_v45 }
 0x47d   : > { %v1315_v47 = vmax.f32 %v1273_v33, 0.0 }
 0x47e   : > { %v1314_v48 = vmax.f32 %v1268_v46, 0.0 }
 0x47f   : > { %1333 = vst [vmem:[%s3825_s24 + $0x48] sm:$0xff] %v1315_v47 }
 0x480   : > { %1332 = vst [vmem:[%s3825_s24 + $0x40] sm:$0xff] %v1314_v48  ;;  %v2407_v9 = vpack.c.bf16 (!%p1875_p12), %v1315_v47, %v1314_v48 }
 0x482   : > { %v2186_v49 = vpop.f32.mrb[26].mxu1  ;;  %2408 = vmatpush3.bf16.msra.mxu0 (!%p1875_p12), %v2407_v9 }
 0x483   : > { %v1283_v50 = vadd.f32 %v2186_v49, %v1874_v18  ;;  %v1277_v51 = vpop.f32.mrb[27].mxu1  ;;  %2409 = vmatprep.subr.bf16.mxu0 (!%p1875_p12), %v3129_v4 }
 0x484   : > { %v1278_v52 = vadd.f32 %v1874_v18, %v1277_v51 }
 0x485   : > { %v1317_v53 = vmax.f32 %v1283_v50, 0.0 }
 0x486   : > { %v1316_v54 = vmax.f32 %v1278_v52, 0.0 }
 0x487   : > { %1335 = vst [vmem:[%s3825_s24 + $0x58] sm:$0xff] %v1317_v53 }
 0x488   : > { %1334 = vst [vmem:[%s3825_s24 + $0x50] sm:$0xff] %v1316_v54  ;;  %v2410_v10 = vpack.c.bf16 (!%p1875_p12), %v1317_v53, %v1316_v54 }
 0x48a   : > { %v2189_v55 = vpop.f32.mrb[28].mxu1  ;;  %2411 = vmatpush3.bf16.msra.mxu0 (!%p1875_p12), %v2410_v10 }
 0x48b   : > { %v1293_v56 = vadd.f32 %v2189_v55, %v1874_v18  ;;  %v1287_v57 = vpop.f32.mrb[29].mxu1  ;;  %2412 = vmatprep.subr.bf16.mxu0 (!%p1875_p12), %v3129_v4 }
 0x48c   : > { %v1288_v58 = vadd.f32 %v1874_v18, %v1287_v57 }
 0x48d   : > { %v1319_v59 = vmax.f32 %v1293_v56, 0.0 }
 0x48e   : > { %v1318_v60 = vmax.f32 %v1288_v58, 0.0 }
 0x48f   : > { %1337 = vst [vmem:[%s3825_s24 + $0x68] sm:$0xff] %v1319_v59 }
 0x490   : > { %1336 = vst [vmem:[%s3825_s24 + $0x60] sm:$0xff] %v1318_v60  ;;  %v2413_v11 = vpack.c.bf16 (!%p1875_p12), %v1319_v59, %v1318_v60 }
 0x492   : > { %v2192_v61 = vpop.f32.mrb[30].mxu1  ;;  %1343 = sbr.rel (%p1875_p12) target bundleno = 1396 (0x574), region = 116  ;;  %2414 = vmatpush3.bf16.msra.mxu0 (!%p1875_p12), %v2413_v11 }
 0x493   : > { %v1303_v62 = vadd.f32 %v2192_v61, %v1874_v18  ;;  %v1297_v63 = vpop.f32.mrb[31].mxu1  ;;  %2415 = vmatprep.subr.bf16.mxu0 (!%p1875_p12), %v3129_v4 }
 0x494   : > { %v1298_v0 = vadd.f32 %v1874_v18, %v1297_v63 }
 0x495   : > { %v1321_v1 = vmax.f32 %v1303_v62, 0.0 }
 0x496   : > { %v1320_v2 = vmax.f32 %v1298_v0, 0.0 }
 0x497   : > { %1339 = vst [vmem:[%s3825_s24 + $0x78] sm:$0xff] %v1321_v1 }
 0x498   : > { %1338 = vst [vmem:[%s3825_s24 + $0x70] sm:$0xff] %v1320_v2  ;;  %v2416_v12 = vpack.c.bf16 (!%p1875_p12), %v1321_v1, %v1320_v2 }
 0x49a   : > { %2417 = vmatpush3.bf16.msra.mxu0 %v2416_v12 }
 0x49d   : > { %2226 = vmatmul.mubr.f32.vlgmr.msra.gmra.mrb[0].mxu0 %v1345_v13 }
 0x570   : > { %v1412_v15 = vpop.f32.mrb[0].mxu0 }
 0x571   : > { %v1416_v16 = vadd.f32 %v1412_v15, %v1344_v14  ;;  %v2227_v17 = vpop.f32.mrb[1].mxu0 }
 0x573   : > { %1417 = vst [vmem:[#allocation3] sm:$0x3] %v1416_v16 }
 0x574 PF: > { %s4054_s18 = sld [smem:[#allocation32_spill]] }
 0x57a   : > { %p1418_p8 = scmp.eq.s32.totalorder %s4054_s18, 1 }
 0x57c   : > { %p1419_p6 = pnand %p1418_p8, %p1340_p1 }
 0x57d   : > { %v1424_v18 = vld [vmem:[#allocation16] sm:$0xff] (!%p1419_p6)  ;;  %v1425_v19 = vld [vmem:[#allocation16 + $0x8] sm:$0xff] (!%p1419_p6)  ;;  %v1426_v20 = vld [vmem:[#allocation16 + $0x10] sm:$0xff] (!%p1419_p6)  ;;  %v3132_v21 = vmov (!%p1419_p6), 0.0|0.0   ;;  %vm3133_vm1 = vmmov (!%p1419_p6), 0   ;;  %v3134_v24 = vmov (!%p1419_p6), 0.0  }
 0x57e   : > { %1422 = sbr.rel (%p1419_p6) target bundleno = 1870 (0x74e), region = 120  ;;  %2418 = vmatprep.subr.bf16.mxu0 (!%p1419_p6), %v3132_v21  ;;  %v2419_v22 = vpack.c.bf16 (!%p1419_p6), %v1425_v19, %v1424_v18  ;;  %v1427_v23 = vld [vmem:[#allocation16 + $0x18] sm:$0xff] (!%p1419_p6)  ;;  %2260 = vmatprep.mubr.msk.f32.mxu0 (!%p1419_p6), %vm3133_vm1, %v3134_v24  ;;  %v1428_v26 = vld [vmem:[#allocation16 + $0x20] sm:$0xff] (!%p1419_p6)  ;;  %v1429_v27 = vld [vmem:[#allocation16 + $0x28] sm:$0xff] (!%p1419_p6)  ;;  %vm1611_vm2 = vcmask (!%p1419_p6), 25600  }
 0x57f   : > { %2442 = vmatprep.subr.bf16.mxu1 (!%p1419_p6), %v3132_v21  ;;  %2295 = vmatprep.mubr.msk.f32.mxu1 (!%p1419_p6), %vm3133_vm1, %v3134_v24  ;;  %v2422_v25 = vpack.c.bf16 (!%p1419_p6), %v1427_v23, %v1426_v20  ;;  %v1518_v28 = vld [vmem:[#allocation19] sm:$0xff] (!%p1419_p6)  ;;  %v1519_v29 = vld [vmem:[#allocation19 + $0x8] sm:$0xff] (!%p1419_p6)  ;;  %v1520_v30 = vld [vmem:[#allocation19 + $0x10] sm:$0xff] (!%p1419_p6)  ;;  %v2425_v32 = vpack.c.bf16 (!%p1419_p6), %v1429_v27, %v1428_v26 }
 0x580   : > { %2420 = vmatpush3.bf16.msra.mxu0 (!%p1419_p6), %v2419_v22  ;;  %v1521_v31 = vld [vmem:[#allocation19 + $0x18] sm:$0xff] (!%p1419_p6)  ;;  %v2443_v34 = vpack.c.bf16 (!%p1419_p6), %v1519_v29, %v1518_v28  ;;  %v1430_v35 = vld [vmem:[#allocation16 + $0x30] sm:$0xff] (!%p1419_p6)  ;;  %v1522_v38 = vld [vmem:[#allocation19 + $0x20] sm:$0xff] (!%p1419_p6) }
 0x581   : > { %2421 = vmatprep.subr.bf16.mxu0 (!%p1419_p6), %v3132_v21  ;;  %v1431_v36 = vld [vmem:[#allocation16 + $0x38] sm:$0xff] (!%p1419_p6)  ;;  %v2446_v37 = vpack.c.bf16 (!%p1419_p6), %v1521_v31, %v1520_v30  ;;  %v1523_v39 = vld [vmem:[#allocation19 + $0x28] sm:$0xff] (!%p1419_p6)  ;;  %v1432_v41 = vld [vmem:[#allocation16 + $0x40] sm:$0xff] (!%p1419_p6) }
 0x582   : > { %2444 = vmatpush3.bf16.msra.mxu1 (!%p1419_p6), %v2443_v34  ;;  %v2428_v40 = vpack.c.bf16 (!%p1419_p6), %v1431_v36, %v1430_v35  ;;  %v1433_v42 = vld [vmem:[#allocation16 + $0x48] sm:$0xff] (!%p1419_p6)  ;;  %v2449_v43 = vpack.c.bf16 (!%p1419_p6), %v1523_v39, %v1522_v38  ;;  %v1524_v44 = vld [vmem:[#allocation19 + $0x30] sm:$0xff] (!%p1419_p6)  ;;  %v1525_v33 = vld [vmem:[#allocation19 + $0x38] sm:$0xff] (!%p1419_p6) }
 0x583   : > { %2445 = vmatprep.subr.bf16.mxu1 (!%p1419_p6), %v3132_v21  ;;  %v2431_v45 = vpack.c.bf16 (!%p1419_p6), %v1433_v42, %v1432_v41  ;;  %v1434_v46 = vld [vmem:[#allocation16 + $0x50] sm:$0xff] (!%p1419_p6)  ;;  %v1435_v47 = vld [vmem:[#allocation16 + $0x58] sm:$0xff] (!%p1419_p6)  ;;  %v2452_v48 = vpack.c.bf16 (!%p1419_p6), %v1525_v33, %v1524_v44  ;;  %v1526_v49 = vld [vmem:[#allocation19 + $0x40] sm:$0xff] (!%p1419_p6) }
 0x584   : > { %2423 = vmatpush3.bf16.msra.mxu0 (!%p1419_p6), %v2422_v25  ;;  %v1527_v50 = vld [vmem:[#allocation19 + $0x48] sm:$0xff] (!%p1419_p6)  ;;  %v2434_v51 = vpack.c.bf16 (!%p1419_p6), %v1435_v47, %v1434_v46  ;;  %v1436_v52 = vld [vmem:[#allocation16 + $0x60] sm:$0xff] (!%p1419_p6)  ;;  %v1528_v55 = vld [vmem:[#allocation19 + $0x50] sm:$0xff] (!%p1419_p6) }
 0x585   : > { %2424 = vmatprep.subr.bf16.mxu0 %v3132_v21  ;;  %v1437_v53 = vld [vmem:[#allocation16 + $0x68] sm:$0xff]  ;;  %v2455_v54 = vpack.c.bf16 %v1527_v50, %v1526_v49  ;;  %v1529_v56 = vld [vmem:[#allocation19 + $0x58] sm:$0xff]  ;;  %v1438_v58 = vld [vmem:[#allocation16 + $0x70] sm:$0xff] }
 0x586   : > { %2447 = vmatpush3.bf16.msra.mxu1 %v2446_v37  ;;  %v2437_v57 = vpack.c.bf16 %v1437_v53, %v1436_v52  ;;  %v1439_v59 = vld [vmem:[#allocation16 + $0x78] sm:$0xff]  ;;  %v2458_v60 = vpack.c.bf16 %v1529_v56, %v1528_v55  ;;  %v1530_v61 = vld [vmem:[#allocation19 + $0x60] sm:$0xff]  ;;  %v1531_v62 = vld [vmem:[#allocation19 + $0x68] sm:$0xff] }
 0x587   : > { %2448 = vmatprep.subr.bf16.mxu1 %v3132_v21  ;;  %v2440_v63 = vpack.c.bf16 %v1439_v59, %v1438_v58  ;;  %v2461_v0 = vpack.c.bf16 %v1531_v62, %v1530_v61  ;;  %v1423_v1 = vld [vmem:[#allocation3] sm:$0x3]  ;;  %v1533_v3 = vld [vmem:[#allocation19 + $0x78] sm:$0xff]  ;;  %v1877_v10 = vld [vmem:[#allocation21] ss:$0 sm:$0xff] }
 0x588   : > { %2426 = vmatpush3.bf16.msra.mxu0 %v2425_v32  ;;  %v1532_v2 = vld [vmem:[#allocation19 + $0x70] sm:$0xff]  ;;  %v1876_v5 = vld [vmem:[#allocation18] ss:$0 sm:$0xff] }
 0x589   : > { %2427 = vmatprep.subr.bf16.mxu0 %v3132_v21  ;;  %v2464_v4 = vpack.c.bf16 %v1533_v3, %v1532_v2 }
 0x58a   : > { %2450 = vmatpush3.bf16.msra.mxu1 %v2449_v43 }
 0x58b   : > { %2451 = vmatprep.subr.bf16.mxu1 %v3132_v21 }
 0x58c   : > { %2429 = vmatpush3.bf16.msra.mxu0 %v2428_v40 }
 0x58d   : > { %2430 = vmatprep.subr.bf16.mxu0 %v3132_v21 }
 0x58e   : > { %2453 = vmatpush3.bf16.msra.mxu1 %v2452_v48 }
 0x58f   : > { %2454 = vmatprep.subr.bf16.mxu1 %v3132_v21 }
 0x590   : > { %2432 = vmatpush3.bf16.msra.mxu0 %v2431_v45 }
 0x591   : > { %2433 = vmatprep.subr.bf16.mxu0 %v3132_v21 }
 0x592   : > { %2456 = vmatpush3.bf16.msra.mxu1 %v2455_v54 }
 0x593   : > { %2457 = vmatprep.subr.bf16.mxu1 %v3132_v21 }
 0x594   : > { %2435 = vmatpush3.bf16.msra.mxu0 %v2434_v51 }
 0x595   : > { %2436 = vmatprep.subr.bf16.mxu0 %v3132_v21 }
 0x596   : > { %2459 = vmatpush3.bf16.msra.mxu1 %v2458_v60 }
 0x597   : > { %2460 = vmatprep.subr.bf16.mxu1 %v3132_v21 }
 0x598   : > { %2438 = vmatpush3.bf16.msra.mxu0 %v2437_v57 }
 0x599   : > { %2439 = vmatprep.subr.bf16.mxu0 %v3132_v21 }
 0x59a   : > { %2462 = vmatpush3.bf16.msra.mxu1 %v2461_v0 }
 0x59b   : > { %2463 = vmatprep.subr.bf16.mxu1 %v3132_v21 }
 0x59c   : > { %2441 = vmatpush3.bf16.msra.mxu0 %v2440_v63 }
 0x59e   : > { %2465 = vmatpush3.bf16.msra.mxu1 %v2464_v4 }
 0x59f   : > { %2261 = vmatmul.mubr.f32.vlgmr.msra.gmra.mrb[0].mxu0 %v1423_v1 }
 0x672   : > { %v1513_v6 = vpop.f32.mrb[0].mxu0 }
 0x673   : > { %v1514_v7 = vadd.f32 %v1876_v5, %v1513_v6  ;;  %v2262_v8 = vpop.f32.mrb[1].mxu0 }
 0x675   : > { %v1517_v9 = vmax.f32 %v1514_v7, 0.0 }
 0x677   : > { %2296 = vmatmul.mubr.f32.vlgmr.msra.gmra.mrb[0].mxu1 %v1517_v9 }
 0x74a   : > { %v1607_v11 = vpop.f32.mrb[0].mxu1 }
 0x74b   : > { %v1608_v12 = vadd.f32 %v1877_v10, %v1607_v11  ;;  %v2297_v13 = vpop.f32.mrb[1].mxu1 }
 0x74d   : > { %1612 = vst.msk [vmem:[#allocation22] sm:$0x3] %vm1611_vm2, %v1608_v12 }
 0x74e PF: > { %p2548_p9 = scmp.eq.s32.totalorder %s3252_s28, 3  ;;  %s3135_s19 = smov [#allocation22]  }
 0x74f   : > { %s1620_s14 = sshll.u32 %s3135_s19, 4  ;;  %s1621_s14 = int_to_ptr.vmem [resolvable:$true] %s1620_s14 }
 0x750   : > { %s2973_s30 = scalar_lea.vmem %s1621_s14, 32  ;;  %p2980_p5 = scmp.lt.s32.totalorder %s1621_s14, %s1621_s14 }
 0x751   : > { %p2974_p13 = scmp.ne.s32.totalorder %s1621_s14, %s2973_s30  ;;  %p2981_p10 = scmp.lt.s32.totalorder %s2973_s30, %s2973_s30 }
 0x753   : > { %p2975_p3 = pnand %p2974_p13, %p2548_p9  ;;  %p2982_p11 = por %p2981_p10, %p2980_p5 }
 0x755   : > { %p2976_p2 = pneg %p2975_p3 }
 0x757   : > { %p2983_p4 = pnand %p2982_p11, %p2976_p2 }
 0x759   : > { %2986 = shalt.err (!%p2983_p4)
}
 0x75a   : > { %s4056_s4 = sld [smem:[#allocation50_spill]] }
 0x760   : > { %s2987_s7 = scalar_lea.hbm %s4056_s4, 32 }
 0x761   : > { %p2988_p0 = scmp.ne.s32.totalorder %s4056_s4, %s2987_s7  ;;  %p2993_p12 = scmp.lt.u32.totalorder %s2987_s7, %s4056_s4 }
 0x763   : > { %p2989_p7 = pnand %p2988_p0, %p2548_p9 }
 0x765   : > { %p2990_p1 = pneg %p2989_p7 }
 0x767   : > { %p2995_p8 = pnand %p2993_p12, %p2990_p1 }
 0x769   : > { %2998 = shalt.err (!%p2995_p8)
}
 0x76a   : > { %2499 = dma.vmem_to_hbm [thread:$0]  (%p2548_p9), %s1621_s14, 32, %s4056_s4, [#allocation6]  }
 0x76b   : > { %3068 = dma.done.wait (%p2548_p9), [#allocation6], 32  }
 0x76c   : > { %3070 = vsyncadd (%p2548_p9), [#allocation6], 4294967264 }
 0x76d PF: > { %s4057_s27 = sld [smem:[#allocation34_spill]]  ;;  %s4058_s17 = sld [smem:[#allocation30_spill]] }
 0x76e   : > { %s4059_s18 = sld [smem:[#allocation31_spill]]  ;;  %s4060_s19 = sld [smem:[#allocation40_spill]] }
 0x76f   : > { %s4061_s15 = sld [smem:[#allocation37_spill]]  ;;  %s4062_s29 = sld [smem:[#allocation36_spill]] }
 0x770   : > { %s4063_s30 = sld [smem:[#allocation39_spill]]  ;;  %s4064_s20 = smov %s3089_s21 }
 0x771   : > { %s4065_s21 = smov %s3093_s22  ;;  %s4067_s23 = smov %s3105_s25 }
 0x772   : > { %s4068_s24 = smov %s3109_s26 }
 0x773   : > { %s34_s27 = sadd.s32 1, %s4057_s27  }
 0x774   : > { %p31_p6 = scmp.ge.s32.totalorder %s34_s27, 6  }
 0x775   : > { %s4066_s22 = smov %s4061_s15  ;;  %s4069_s25 = smov %s4062_s29 }
 0x776   : > { %s4070_s26 = smov %s4063_s30  ;;  %33 = sbr.rel (!%p31_p6) target bundleno = 26 (0x1a), region = 195 }
 0x77d   :  { %1633 = vsyncpa [#allocation5], 1 }
 0x77e   :  { %1635 = vsyncpa [#allocation5 + $0x1], 1 }
 0x77f   :  { %1636 = vsyncpa [#allocation8], 1 }
 0x780   :  { %1638 = vsyncpa [#allocation8 + $0x1], 1 }
 0x781   :  { %1639 = vsyncpa [#allocation11], 1 }
 0x782   :  { %1641 = vsyncpa [#allocation11 + $0x1], 1 }
 0x783   :  { %1642 = vsyncpa [#allocation14], 1 }
 0x784   :  { %1644 = vsyncpa [#allocation14 + $0x1], 1 }
 0x785   :  { %1645 = vsyncpa [#allocation17], 1 }
 0x786   :  { %1646 = vsyncpa [#allocation20], 1 }
 0x787   :  { %1647 = vsyncpa [#allocation6], 1 }
 0x788   :  { %1649 = vsyncpa [#allocation6 + $0x1], 1 }

</bundles_post_ra>
